<compile_context>
chip_gen: v7x
topology: tpu7x:2x2x1
jax: 0.10.0
libtpu: 0.0.40
codegen_flags: <defaults>
</compile_context>

<pallas_src>
import functools

import jax
import jax.numpy as jnp
import numpy as np
from jax.experimental import pallas as pl
from jax.experimental.pallas import tpu as pltpu

NUM_LAYERS = 3   # num_conv_layers
KSIZE = 3        # conv_kernel_size (all 3)
LN_EPS = 1e-5    # nn.LayerNorm default


def _disc_kernel(S, lens_ref, x_ref, cw_ref, cb_ref, lnw_ref, lnb_ref,
                 wa_ref, wf_ref, ab_ref, out_ref):
    """One grid step == TB batch elements packed along sublanes.

    x_ref   : (TB*S, H)  activations (bf16 or f32)
    cw_ref  : (L, 3H, H) fused conv weights (taps stacked along rows)
    cb/lnw/lnb : (L, 1, H) f32
    wa_ref/wf_ref : (1, H) f32 attention / fc weight rows
    ab_ref  : (1, 2) f32 in SMEM  -> [attention bias, fc bias]
    lens_ref: (B,) int32 in SMEM  -> valid lengths per batch element
    out_ref : (1, TB, 1) f32 logits
    """
    M, H = x_ref.shape
    TB = M // S
    cdt = x_ref.dtype                         # matmul compute dtype
    base = pl.program_id(0) * TB              # first batch index of this tile

    # Per-row position within each sequence and validity mask, built from
    # SMEM scalars (no lane-sparse mask DMA).  Hoisted out of the layer loop.
    pos_s = jax.lax.broadcasted_iota(jnp.int32, (S, 1), 0)            # (S, 1)
    pos = jnp.concatenate([pos_s] * TB, axis=0)                       # (M, 1)
    lens_m = jnp.concatenate(
        [jnp.full((S, 1), lens_ref[base + i], jnp.int32) for i in range(TB)],
        axis=0)                                                       # (M, 1)
    keep = (pos < lens_m).astype(jnp.float32)                         # (M, 1)
    first = pos == 0                                                  # (M, 1)
    last = pos == S - 1                                               # (M, 1)

    # masked_fill of the conv input (only needed once; every layer output
    # below already has padded rows == 0).
    h = x_ref[...] * keep.astype(cdt)                                 # (M, H)

    for l in range(NUM_LAYERS):               # static unroll (3 conv blocks)
        hb = h.astype(cdt)
        # 'same' zero padding, masked at every sequence boundary so packed
        # batches do not leak into each other.
        h_m1 = jnp.where(first, jnp.zeros((), cdt), jnp.roll(hb, 1, axis=0))
        h_p1 = jnp.where(last, jnp.zeros((), cdt), jnp.roll(hb, -1, axis=0))
        # fused 3-tap conv: one (M, 3H) @ (3H, H) MXU matmul, f32 accumulation
        h3 = jnp.concatenate([h_m1, hb, h_p1], axis=-1)               # (M, 3H)
        out = jnp.dot(h3, cw_ref[l], preferred_element_type=jnp.float32)
        out = out + cb_ref[l]
        # TransposeLayerNorm == LayerNorm over the channel (lane) axis, in f32
        mu = jnp.mean(out, axis=-1, keepdims=True)
        var = jnp.mean((out - mu) ** 2, axis=-1, keepdims=True)
        out = (out - mu) * jax.lax.rsqrt(var + LN_EPS)
        out = (out * lnw_ref[l] + lnb_ref[l]) * keep   # the one mask that matters
        h = jnp.maximum(out, 0.0)             # ReLU; padded rows already zero
        # Dropout is identity at inference time

    # Attention pooling: VPU multiply + lane reduce (no (.,H)@(H,1) matmul).
    scores = jnp.sum(h * wa_ref[...], axis=-1, keepdims=True) + ab_ref[0, 0]
    scores = jnp.where(keep > 0.0, scores, jnp.float32(-1e30))        # (M, 1)

    # Per-sequence masked softmax + weighted sum (small static unroll; all 2-D
    # sublane reductions).
    logit_parts = []
    for i in range(TB):
        sl = slice(i * S, (i + 1) * S)
        s_i = scores[sl]                                              # (S, 1)
        h_i = h[sl]                                                   # (S, H)
        m_i = jnp.max(s_i, axis=0, keepdims=True)                     # (1, 1)
        e_i = jnp.exp(s_i - m_i)                                      # (S, 1)
        w_i = e_i / jnp.sum(e_i, axis=0, keepdims=True)               # (S, 1)
        pooled_i = jnp.sum(w_i * h_i, axis=0, keepdims=True)          # (1, H)
        logit_parts.append(
            jnp.sum(pooled_i * wf_ref[...], axis=-1, keepdims=True))  # (1, 1)
    logit = jnp.concatenate(logit_parts, axis=0) + ab_ref[0, 1]       # (TB, 1)
    out_ref[...] = logit.reshape(1, TB, 1)


def _choose_batch_tile(B, S, target_rows=256):
    """Pick TB (batches per grid step) so TB*S ~ 128-256 rows and TB | B."""
    tb = max(1, min(B, max(1, target_rows // S)))
    while tb > 1 and (B % tb != 0):
        tb -= 1
    # block sublane dim must be a multiple of 8 unless it spans the full array
    if tb < B and (tb * S) % 8 != 0:
        tb = B
    return tb


@functools.partial(jax.jit, static_argnames=("matmul_dtype",))
def adv_seq_discriminator(x, x_mask, params, matmul_dtype=jnp.bfloat16):
    """x: (B, S, H) float32; x_mask: (B, S) bool (True = padding, right-padded)."""
    B, S, H = x.shape
    cw, cb, lnw, lnb, wa, ba, wf, bf = params
    TB = _choose_batch_tile(B, S)

    # right-padding mask -> valid lengths (scalar prefetch, SMEM)
    lengths = jnp.sum(jnp.logical_not(x_mask), axis=-1).astype(jnp.int32)  # (B,)

    x2 = x.reshape(B * S, H).astype(matmul_dtype)             # (B*S, H)
    cw3 = cw.reshape(NUM_LAYERS, KSIZE * H, H).astype(matmul_dtype)
    wa_row = wa.reshape(1, H).astype(jnp.float32)
    wf_row = wf.reshape(1, H).astype(jnp.float32)
    ab = jnp.concatenate([ba.reshape(1, 1), bf.reshape(1, 1)], axis=1)  # (1, 2)

    kernel = functools.partial(_disc_kernel, S)
    out = pl.pallas_call(
        kernel,
        out_shape=jax.ShapeDtypeStruct((B // TB, TB, 1), jnp.float32),
        grid_spec=pltpu.PrefetchScalarGridSpec(
            num_scalar_prefetch=1,                 # lengths -> SMEM
            grid=(B // TB,),
            in_specs=[
                pl.BlockSpec((TB * S, H), lambda g, lens: (g, 0)),          # x
                pl.BlockSpec((NUM_LAYERS, KSIZE * H, H),
                             lambda g, lens: (0, 0, 0)),                    # conv W
                pl.BlockSpec((NUM_LAYERS, 1, H), lambda g, lens: (0, 0, 0)),  # conv b
                pl.BlockSpec((NUM_LAYERS, 1, H), lambda g, lens: (0, 0, 0)),  # ln gamma
                pl.BlockSpec((NUM_LAYERS, 1, H), lambda g, lens: (0, 0, 0)),  # ln beta
                pl.BlockSpec((1, H), lambda g, lens: (0, 0)),               # att W row
                pl.BlockSpec((1, H), lambda g, lens: (0, 0)),               # fc W row
                pl.BlockSpec(memory_space=pltpu.MemorySpace.SMEM),          # [ba, bf]
            ],
            out_specs=pl.BlockSpec((1, TB, 1), lambda g, lens: (g, 0, 0)),
        ),
        compiler_params=pltpu.CompilerParams(
            dimension_semantics=("parallel",),     # batch tiles shard on megacore
            vmem_limit_bytes=32 * 1024 * 1024,     # explicit (v5e default is 16 MiB)
        ),
    )(lengths, x2, cw3, cb, lnw, lnb, wa_row, wf_row, ab)
    return out.reshape(B, 1)


def reference(x, x_mask, params):
    """Pure-JAX f32 reference with the PyTorch module's exact semantics."""
    cw, cb, lnw, lnb, wa, ba, wf, bf = params
    keep = (1.0 - x_mask.astype(jnp.float32))[..., None]  # (B, S, 1)
    h = x
    for l in range(NUM_LAYERS):
        h = h * keep
        h_m1 = jnp.pad(h, ((0, 0), (1, 0), (0, 0)))[:, :-1]
        h_p1 = jnp.pad(h, ((0, 0), (0, 1), (0, 0)))[:, 1:]
        out = (jnp.einsum('bsi,io->bso', h_m1, cw[l, 0])
               + jnp.einsum('bsi,io->bso', h, cw[l, 1])
               + jnp.einsum('bsi,io->bso', h_p1, cw[l, 2]))
        out = (out + cb[l]) * keep
        mu = out.mean(-1, keepdims=True)
        var = ((out - mu) ** 2).mean(-1, keepdims=True)
        out = (out - mu) * jax.lax.rsqrt(var + LN_EPS)
        out = (out * lnw[l] + lnb[l]) * keep
        out = jnp.maximum(out, 0.0) * keep
        h = out
    scores = jnp.einsum('bsh,hk->bsk', h, wa) + ba[0, 0]       # (B, S, 1)
    scores = jnp.where(x_mask[..., None], -1e30, scores)
    w = jax.nn.softmax(scores, axis=1)
    pooled = (w * h).sum(1)                                    # (B, H)
    return pooled @ wf + bf[0, 0]


def init_params(key, H):
    """Deterministic synthetic parameters (shapes follow the torch module)."""
    k0, k1, k2, k3, k4, k5, k6, k7 = jax.random.split(key, 8)
    # conv weights stored as (layer, tap, in_ch, out_ch) == torch W[:, :, k].T
    cw = jax.random.normal(k0, (NUM_LAYERS, KSIZE, H, H), jnp.float32) / np.sqrt(H * KSIZE)
    cb = jax.random.normal(k1, (NUM_LAYERS, 1, H), jnp.float32) * 0.01
    lnw = 1.0 + 0.1 * jax.random.normal(k4, (NUM_LAYERS, 1, H), jnp.float32)
    lnb = 0.1 * jax.random.normal(k5, (NUM_LAYERS, 1, H), jnp.float32)
    wa = jax.random.normal(k2, (H, 1), jnp.float32) / np.sqrt(H)   # AttentionPooling linear
    ba = 0.1 * jax.random.normal(k6, (1, 1), jnp.float32)
    wf = jax.random.normal(k3, (H, 1), jnp.float32) / np.sqrt(H)   # final fc
    bf = 0.1 * jax.random.normal(k7, (1, 1), jnp.float32)
    return (cw, cb, lnw, lnb, wa, ba, wf, bf)


if __name__ == "__main__":
    B, S, H = 2, 16, 32   # small shapes: batch=2, seq=16, hidden=32
    key = jax.random.PRNGKey(0)
    kx, kp = jax.random.split(key)
    x = jax.random.normal(kx, (B, S, H), jnp.float32)
    lengths = jnp.array([16, 10], jnp.int32)
    x_mask = jnp.arange(S)[None, :] >= lengths[:, None]   # (B, S) bool, True = pad
    params = init_params(kp, H)

    ref = reference(x, x_mask, params)

    # Tight structural check with f32 MXU path.
    out_f32 = jax.block_until_ready(
        adv_seq_discriminator(x, x_mask, params, matmul_dtype=jnp.float32))
    np.testing.assert_allclose(np.asarray(out_f32), np.asarray(ref),
                               rtol=1e-3, atol=1e-3)

    # Production path: bf16 MXU inputs (f32 accumulation / LN / softmax).
    out = jax.block_until_ready(adv_seq_discriminator(x, x_mask, params))
    assert out.shape == (B, 1)
    np.testing.assert_allclose(np.asarray(out), np.asarray(ref),
                               rtol=1e-1, atol=1e-1)   # loosened for bf16 matmuls
    print("KERNEL_OK")
</pallas_src>

<mosaic_0001>
module attributes {stable_mosaic.version = 11 : i64} {
  func.func @_disc_kernel(%arg0: i32, %arg1: memref<2xi32, #tpu.memory_space<smem>>, %arg2: memref<32x32xf32, #tpu.memory_space<vmem>>, %arg3: memref<3x96x32xf32, #tpu.memory_space<vmem>>, %arg4: memref<3x1x32xf32, #tpu.memory_space<vmem>>, %arg5: memref<3x1x32xf32, #tpu.memory_space<vmem>>, %arg6: memref<3x1x32xf32, #tpu.memory_space<vmem>>, %arg7: memref<1x32xf32, #tpu.memory_space<vmem>>, %arg8: memref<1x32xf32, #tpu.memory_space<vmem>>, %arg9: memref<1x2xf32, #tpu.memory_space<smem>>, %arg10: memref<1x2x1xf32, #tpu.memory_space<vmem>>) attributes {dimension_semantics = [#tpu.dimension_semantics<parallel>], iteration_bounds = array<i64: 1>, scalar_prefetch = 1 : i64, scratch_operands = 0 : i64, tpu.core_type = #tpu.core_type<tc>, window_params = [{transform_indices = @transform_0, window_bounds = array<i64: 32, 32>}, {pipeline_mode = #tpu.pipeline_mode<synchronous>, transform_indices = @transform_1, window_bounds = array<i64: 3, 96, 32>}, {pipeline_mode = #tpu.pipeline_mode<synchronous>, transform_indices = @transform_2, window_bounds = array<i64: 3, 1, 32>}, {pipeline_mode = #tpu.pipeline_mode<synchronous>, transform_indices = @transform_3, window_bounds = array<i64: 3, 1, 32>}, {pipeline_mode = #tpu.pipeline_mode<synchronous>, transform_indices = @transform_4, window_bounds = array<i64: 3, 1, 32>}, {pipeline_mode = #tpu.pipeline_mode<synchronous>, transform_indices = @transform_5, window_bounds = array<i64: 1, 32>}, {pipeline_mode = #tpu.pipeline_mode<synchronous>, transform_indices = @transform_6, window_bounds = array<i64: 1, 32>}, {transform_indices = @transform_7, window_bounds = array<i64: 1, 2>}, {transform_indices = @transform_8, window_bounds = array<i64: 1, 2, 1>}]} {
    %c2_i32 = arith.constant 2 : i32
    %0 = arith.muli %arg0, %c2_i32 : i32
    %1 = tpu.iota {dimensions = array<i32: 0>} : vector<16x1xi32>
    %2 = tpu.concatenate %1, %1 in 0 : vector<16x1xi32>, vector<16x1xi32> -> vector<32x1xi32>
    %c0_i32 = arith.constant 0 : i32
    %3 = arith.addi %0, %c0_i32 : i32
    %4 = arith.index_cast %3 : i32 to index
    %5 = memref.load %arg1[%4] : memref<2xi32, #tpu.memory_space<smem>>
    %6 = vector.broadcast %5 : i32 to vector<16x1xi32>
    %c1_i32 = arith.constant 1 : i32
    %7 = arith.addi %0, %c1_i32 : i32
    %8 = arith.index_cast %7 : i32 to index
    %9 = memref.load %arg1[%8] : memref<2xi32, #tpu.memory_space<smem>>
    %10 = vector.broadcast %9 : i32 to vector<16x1xi32>
    %11 = tpu.concatenate %6, %10 in 0 : vector<16x1xi32>, vector<16x1xi32> -> vector<32x1xi32>
    %12 = arith.cmpi slt, %2, %11 : vector<32x1xi32>
    %13 = arith.extui %12 : vector<32x1xi1> to vector<32x1xi32>
    %14 = arith.sitofp %13 : vector<32x1xi32> to vector<32x1xf32>
    %c0_i32_0 = arith.constant 0 : i32
    %15 = vector.broadcast %c0_i32_0 : i32 to vector<32x1xi32>
    %16 = arith.cmpi eq, %2, %15 : vector<32x1xi32>
    %c15_i32 = arith.constant 15 : i32
    %17 = vector.broadcast %c15_i32 : i32 to vector<32x1xi32>
    %18 = arith.cmpi eq, %2, %17 : vector<32x1xi32>
    %c0 = arith.constant 0 : index
    %c0_1 = arith.constant 0 : index
    %19 = vector.load %arg2[%c0, %c0_1] : memref<32x32xf32, #tpu.memory_space<vmem>>, vector<32x32xf32>
    %20 = vector.broadcast %14 : vector<32x1xf32> to vector<32x32xf32>
    %21 = arith.mulf %19, %20 : vector<32x32xf32>
    %22 = vector.extract_strided_slice %21 {offsets = [31, 0], sizes = [1, 32], strides = [1, 1]} : vector<32x32xf32> to vector<1x32xf32>
    %23 = vector.extract_strided_slice %21 {offsets = [0, 0], sizes = [31, 32], strides = [1, 1]} : vector<32x32xf32> to vector<31x32xf32>
    %24 = tpu.concatenate %22, %23 in 0 : vector<1x32xf32>, vector<31x32xf32> -> vector<32x32xf32>
    %cst = arith.constant 0.000000e+00 : f32
    %25 = vector.shape_cast %16 : vector<32x1xi1> to vector<32x1xi1>
    %26 = vector.broadcast %25 : vector<32x1xi1> to vector<32x32xi1>
    %27 = vector.broadcast %cst : f32 to vector<32x32xf32>
    %28 = arith.select %26, %27, %24 : vector<32x32xi1>, vector<32x32xf32>
    %29 = vector.extract_strided_slice %21 {offsets = [1, 0], sizes = [31, 32], strides = [1, 1]} : vector<32x32xf32> to vector<31x32xf32>
    %30 = vector.extract_strided_slice %21 {offsets = [0, 0], sizes = [1, 32], strides = [1, 1]} : vector<32x32xf32> to vector<1x32xf32>
    %31 = tpu.concatenate %29, %30 in 0 : vector<31x32xf32>, vector<1x32xf32> -> vector<32x32xf32>
    %cst_2 = arith.constant 0.000000e+00 : f32
    %32 = vector.shape_cast %18 : vector<32x1xi1> to vector<32x1xi1>
    %33 = vector.broadcast %32 : vector<32x1xi1> to vector<32x32xi1>
    %34 = vector.broadcast %cst_2 : f32 to vector<32x32xf32>
    %35 = arith.select %33, %34, %31 : vector<32x32xi1>, vector<32x32xf32>
    %36 = tpu.concatenate %28, %21, %35 in 1 : vector<32x32xf32>, vector<32x32xf32>, vector<32x32xf32> -> vector<32x96xf32>
    %c0_3 = arith.constant 0 : index
    %c0_4 = arith.constant 0 : index
    %c0_5 = arith.constant 0 : index
    %37 = vector.load %arg3[%c0_3, %c0_4, %c0_5] : memref<3x96x32xf32, #tpu.memory_space<vmem>>, vector<1x96x32xf32>
    %38 = vector.shape_cast %37 : vector<1x96x32xf32> to vector<96x32xf32>
    %cst_6 = arith.constant dense<0.000000e+00> : vector<32x32xf32>
    %39 = tpu.matmul %36, %38, %cst_6 {dimension_numbers = #tpu.dot_dimension_numbers<[1], [0], [0], [1], [0, 0, 1, 1], [], []>} : vector<32x96xf32>, vector<96x32xf32>, vector<32x32xf32> -> vector<32x32xf32>
    %c0_7 = arith.constant 0 : index
    %c0_8 = arith.constant 0 : index
    %c0_9 = arith.constant 0 : index
    %40 = vector.load %arg4[%c0_7, %c0_8, %c0_9] : memref<3x1x32xf32, #tpu.memory_space<vmem>>, vector<1x1x32xf32>
    %41 = vector.shape_cast %40 : vector<1x1x32xf32> to vector<1x32xf32>
    %42 = vector.broadcast %41 : vector<1x32xf32> to vector<32x32xf32>
    %43 = arith.addf %39, %42 : vector<32x32xf32>
    %cst_10 = arith.constant dense<0.000000e+00> : vector<32xf32>
    %44 = vector.multi_reduction <add>, %43, %cst_10 [1] : vector<32x32xf32> to vector<32xf32>
    %45 = vector.shape_cast %44 : vector<32xf32> to vector<32x1xf32>
    %cst_11 = arith.constant 3.200000e+01 : f32
    %46 = vector.broadcast %cst_11 : f32 to vector<32x1xf32>
    %47 = arith.divf %45, %46 : vector<32x1xf32>
    %48 = vector.broadcast %47 : vector<32x1xf32> to vector<32x32xf32>
    %49 = arith.subf %43, %48 : vector<32x32xf32>
    %50 = arith.mulf %49, %49 : vector<32x32xf32>
    %cst_12 = arith.constant dense<0.000000e+00> : vector<32xf32>
    %51 = vector.multi_reduction <add>, %50, %cst_12 [1] : vector<32x32xf32> to vector<32xf32>
    %52 = vector.shape_cast %51 : vector<32xf32> to vector<32x1xf32>
    %cst_13 = arith.constant 3.200000e+01 : f32
    %53 = vector.broadcast %cst_13 : f32 to vector<32x1xf32>
    %54 = arith.divf %52, %53 : vector<32x1xf32>
    %55 = vector.broadcast %47 : vector<32x1xf32> to vector<32x32xf32>
    %56 = arith.subf %43, %55 : vector<32x32xf32>
    %cst_14 = arith.constant 9.99999974E-6 : f32
    %57 = vector.broadcast %cst_14 : f32 to vector<32x1xf32>
    %58 = arith.addf %54, %57 : vector<32x1xf32>
    %59 = math.rsqrt %58 : vector<32x1xf32>
    %60 = vector.broadcast %59 : vector<32x1xf32> to vector<32x32xf32>
    %61 = arith.mulf %56, %60 : vector<32x32xf32>
    %c0_15 = arith.constant 0 : index
    %c0_16 = arith.constant 0 : index
    %c0_17 = arith.constant 0 : index
    %62 = vector.load %arg5[%c0_15, %c0_16, %c0_17] : memref<3x1x32xf32, #tpu.memory_space<vmem>>, vector<1x1x32xf32>
    %63 = vector.shape_cast %62 : vector<1x1x32xf32> to vector<1x32xf32>
    %64 = vector.broadcast %63 : vector<1x32xf32> to vector<32x32xf32>
    %65 = arith.mulf %61, %64 : vector<32x32xf32>
    %c0_18 = arith.constant 0 : index
    %c0_19 = arith.constant 0 : index
    %c0_20 = arith.constant 0 : index
    %66 = vector.load %arg6[%c0_18, %c0_19, %c0_20] : memref<3x1x32xf32, #tpu.memory_space<vmem>>, vector<1x1x32xf32>
    %67 = vector.shape_cast %66 : vector<1x1x32xf32> to vector<1x32xf32>
    %68 = vector.broadcast %67 : vector<1x32xf32> to vector<32x32xf32>
    %69 = arith.addf %65, %68 : vector<32x32xf32>
    %70 = vector.broadcast %14 : vector<32x1xf32> to vector<32x32xf32>
    %71 = arith.mulf %69, %70 : vector<32x32xf32>
    %cst_21 = arith.constant 0.000000e+00 : f32
    %72 = vector.broadcast %cst_21 : f32 to vector<32x32xf32>
    %73 = arith.maximumf %71, %72 : vector<32x32xf32>
    %74 = vector.extract_strided_slice %73 {offsets = [31, 0], sizes = [1, 32], strides = [1, 1]} : vector<32x32xf32> to vector<1x32xf32>
    %75 = vector.extract_strided_slice %73 {offsets = [0, 0], sizes = [31, 32], strides = [1, 1]} : vector<32x32xf32> to vector<31x32xf32>
    %76 = tpu.concatenate %74, %75 in 0 : vector<1x32xf32>, vector<31x32xf32> -> vector<32x32xf32>
    %cst_22 = arith.constant 0.000000e+00 : f32
    %77 = vector.shape_cast %16 : vector<32x1xi1> to vector<32x1xi1>
    %78 = vector.broadcast %77 : vector<32x1xi1> to vector<32x32xi1>
    %79 = vector.broadcast %cst_22 : f32 to vector<32x32xf32>
    %80 = arith.select %78, %79, %76 : vector<32x32xi1>, vector<32x32xf32>
    %81 = vector.extract_strided_slice %73 {offsets = [1, 0], sizes = [31, 32], strides = [1, 1]} : vector<32x32xf32> to vector<31x32xf32>
    %82 = vector.extract_strided_slice %73 {offsets = [0, 0], sizes = [1, 32], strides = [1, 1]} : vector<32x32xf32> to vector<1x32xf32>
    %83 = tpu.concatenate %81, %82 in 0 : vector<31x32xf32>, vector<1x32xf32> -> vector<32x32xf32>
    %cst_23 = arith.constant 0.000000e+00 : f32
    %84 = vector.shape_cast %18 : vector<32x1xi1> to vector<32x1xi1>
    %85 = vector.broadcast %84 : vector<32x1xi1> to vector<32x32xi1>
    %86 = vector.broadcast %cst_23 : f32 to vector<32x32xf32>
    %87 = arith.select %85, %86, %83 : vector<32x32xi1>, vector<32x32xf32>
    %88 = tpu.concatenate %80, %73, %87 in 1 : vector<32x32xf32>, vector<32x32xf32>, vector<32x32xf32> -> vector<32x96xf32>
    %c1 = arith.constant 1 : index
    %c0_24 = arith.constant 0 : index
    %c0_25 = arith.constant 0 : index
    %89 = vector.load %arg3[%c1, %c0_24, %c0_25] : memref<3x96x32xf32, #tpu.memory_space<vmem>>, vector<1x96x32xf32>
    %90 = vector.shape_cast %89 : vector<1x96x32xf32> to vector<96x32xf32>
    %cst_26 = arith.constant dense<0.000000e+00> : vector<32x32xf32>
    %91 = tpu.matmul %88, %90, %cst_26 {dimension_numbers = #tpu.dot_dimension_numbers<[1], [0], [0], [1], [0, 0, 1, 1], [], []>} : vector<32x96xf32>, vector<96x32xf32>, vector<32x32xf32> -> vector<32x32xf32>
    %c1_27 = arith.constant 1 : index
    %c0_28 = arith.constant 0 : index
    %c0_29 = arith.constant 0 : index
    %92 = vector.load %arg4[%c1_27, %c0_28, %c0_29] : memref<3x1x32xf32, #tpu.memory_space<vmem>>, vector<1x1x32xf32>
    %93 = vector.shape_cast %92 : vector<1x1x32xf32> to vector<1x32xf32>
    %94 = vector.broadcast %93 : vector<1x32xf32> to vector<32x32xf32>
    %95 = arith.addf %91, %94 : vector<32x32xf32>
    %cst_30 = arith.constant dense<0.000000e+00> : vector<32xf32>
    %96 = vector.multi_reduction <add>, %95, %cst_30 [1] : vector<32x32xf32> to vector<32xf32>
    %97 = vector.shape_cast %96 : vector<32xf32> to vector<32x1xf32>
    %cst_31 = arith.constant 3.200000e+01 : f32
    %98 = vector.broadcast %cst_31 : f32 to vector<32x1xf32>
    %99 = arith.divf %97, %98 : vector<32x1xf32>
    %100 = vector.broadcast %99 : vector<32x1xf32> to vector<32x32xf32>
    %101 = arith.subf %95, %100 : vector<32x32xf32>
    %102 = arith.mulf %101, %101 : vector<32x32xf32>
    %cst_32 = arith.constant dense<0.000000e+00> : vector<32xf32>
    %103 = vector.multi_reduction <add>, %102, %cst_32 [1] : vector<32x32xf32> to vector<32xf32>
    %104 = vector.shape_cast %103 : vector<32xf32> to vector<32x1xf32>
    %cst_33 = arith.constant 3.200000e+01 : f32
    %105 = vector.broadcast %cst_33 : f32 to vector<32x1xf32>
    %106 = arith.divf %104, %105 : vector<32x1xf32>
    %107 = vector.broadcast %99 : vector<32x1xf32> to vector<32x32xf32>
    %108 = arith.subf %95, %107 : vector<32x32xf32>
    %cst_34 = arith.constant 9.99999974E-6 : f32
    %109 = vector.broadcast %cst_34 : f32 to vector<32x1xf32>
    %110 = arith.addf %106, %109 : vector<32x1xf32>
    %111 = math.rsqrt %110 : vector<32x1xf32>
    %112 = vector.broadcast %111 : vector<32x1xf32> to vector<32x32xf32>
    %113 = arith.mulf %108, %112 : vector<32x32xf32>
    %c1_35 = arith.constant 1 : index
    %c0_36 = arith.constant 0 : index
    %c0_37 = arith.constant 0 : index
    %114 = vector.load %arg5[%c1_35, %c0_36, %c0_37] : memref<3x1x32xf32, #tpu.memory_space<vmem>>, vector<1x1x32xf32>
    %115 = vector.shape_cast %114 : vector<1x1x32xf32> to vector<1x32xf32>
    %116 = vector.broadcast %115 : vector<1x32xf32> to vector<32x32xf32>
    %117 = arith.mulf %113, %116 : vector<32x32xf32>
    %c1_38 = arith.constant 1 : index
    %c0_39 = arith.constant 0 : index
    %c0_40 = arith.constant 0 : index
    %118 = vector.load %arg6[%c1_38, %c0_39, %c0_40] : memref<3x1x32xf32, #tpu.memory_space<vmem>>, vector<1x1x32xf32>
    %119 = vector.shape_cast %118 : vector<1x1x32xf32> to vector<1x32xf32>
    %120 = vector.broadcast %119 : vector<1x32xf32> to vector<32x32xf32>
    %121 = arith.addf %117, %120 : vector<32x32xf32>
    %122 = vector.broadcast %14 : vector<32x1xf32> to vector<32x32xf32>
    %123 = arith.mulf %121, %122 : vector<32x32xf32>
    %cst_41 = arith.constant 0.000000e+00 : f32
    %124 = vector.broadcast %cst_41 : f32 to vector<32x32xf32>
    %125 = arith.maximumf %123, %124 : vector<32x32xf32>
    %126 = vector.extract_strided_slice %125 {offsets = [31, 0], sizes = [1, 32], strides = [1, 1]} : vector<32x32xf32> to vector<1x32xf32>
    %127 = vector.extract_strided_slice %125 {offsets = [0, 0], sizes = [31, 32], strides = [1, 1]} : vector<32x32xf32> to vector<31x32xf32>
    %128 = tpu.concatenate %126, %127 in 0 : vector<1x32xf32>, vector<31x32xf32> -> vector<32x32xf32>
    %cst_42 = arith.constant 0.000000e+00 : f32
    %129 = vector.shape_cast %16 : vector<32x1xi1> to vector<32x1xi1>
    %130 = vector.broadcast %129 : vector<32x1xi1> to vector<32x32xi1>
    %131 = vector.broadcast %cst_42 : f32 to vector<32x32xf32>
    %132 = arith.select %130, %131, %128 : vector<32x32xi1>, vector<32x32xf32>
    %133 = vector.extract_strided_slice %125 {offsets = [1, 0], sizes = [31, 32], strides = [1, 1]} : vector<32x32xf32> to vector<31x32xf32>
    %134 = vector.extract_strided_slice %125 {offsets = [0, 0], sizes = [1, 32], strides = [1, 1]} : vector<32x32xf32> to vector<1x32xf32>
    %135 = tpu.concatenate %133, %134 in 0 : vector<31x32xf32>, vector<1x32xf32> -> vector<32x32xf32>
    %cst_43 = arith.constant 0.000000e+00 : f32
    %136 = vector.shape_cast %18 : vector<32x1xi1> to vector<32x1xi1>
    %137 = vector.broadcast %136 : vector<32x1xi1> to vector<32x32xi1>
    %138 = vector.broadcast %cst_43 : f32 to vector<32x32xf32>
    %139 = arith.select %137, %138, %135 : vector<32x32xi1>, vector<32x32xf32>
    %140 = tpu.concatenate %132, %125, %139 in 1 : vector<32x32xf32>, vector<32x32xf32>, vector<32x32xf32> -> vector<32x96xf32>
    %c2 = arith.constant 2 : index
    %c0_44 = arith.constant 0 : index
    %c0_45 = arith.constant 0 : index
    %141 = vector.load %arg3[%c2, %c0_44, %c0_45] : memref<3x96x32xf32, #tpu.memory_space<vmem>>, vector<1x96x32xf32>
    %142 = vector.shape_cast %141 : vector<1x96x32xf32> to vector<96x32xf32>
    %cst_46 = arith.constant dense<0.000000e+00> : vector<32x32xf32>
    %143 = tpu.matmul %140, %142, %cst_46 {dimension_numbers = #tpu.dot_dimension_numbers<[1], [0], [0], [1], [0, 0, 1, 1], [], []>} : vector<32x96xf32>, vector<96x32xf32>, vector<32x32xf32> -> vector<32x32xf32>
    %c2_47 = arith.constant 2 : index
    %c0_48 = arith.constant 0 : index
    %c0_49 = arith.constant 0 : index
    %144 = vector.load %arg4[%c2_47, %c0_48, %c0_49] : memref<3x1x32xf32, #tpu.memory_space<vmem>>, vector<1x1x32xf32>
    %145 = vector.shape_cast %144 : vector<1x1x32xf32> to vector<1x32xf32>
    %146 = vector.broadcast %145 : vector<1x32xf32> to vector<32x32xf32>
    %147 = arith.addf %143, %146 : vector<32x32xf32>
    %cst_50 = arith.constant dense<0.000000e+00> : vector<32xf32>
    %148 = vector.multi_reduction <add>, %147, %cst_50 [1] : vector<32x32xf32> to vector<32xf32>
    %149 = vector.shape_cast %148 : vector<32xf32> to vector<32x1xf32>
    %cst_51 = arith.constant 3.200000e+01 : f32
    %150 = vector.broadcast %cst_51 : f32 to vector<32x1xf32>
    %151 = arith.divf %149, %150 : vector<32x1xf32>
    %152 = vector.broadcast %151 : vector<32x1xf32> to vector<32x32xf32>
    %153 = arith.subf %147, %152 : vector<32x32xf32>
    %154 = arith.mulf %153, %153 : vector<32x32xf32>
    %cst_52 = arith.constant dense<0.000000e+00> : vector<32xf32>
    %155 = vector.multi_reduction <add>, %154, %cst_52 [1] : vector<32x32xf32> to vector<32xf32>
    %156 = vector.shape_cast %155 : vector<32xf32> to vector<32x1xf32>
    %cst_53 = arith.constant 3.200000e+01 : f32
    %157 = vector.broadcast %cst_53 : f32 to vector<32x1xf32>
    %158 = arith.divf %156, %157 : vector<32x1xf32>
    %159 = vector.broadcast %151 : vector<32x1xf32> to vector<32x32xf32>
    %160 = arith.subf %147, %159 : vector<32x32xf32>
    %cst_54 = arith.constant 9.99999974E-6 : f32
    %161 = vector.broadcast %cst_54 : f32 to vector<32x1xf32>
    %162 = arith.addf %158, %161 : vector<32x1xf32>
    %163 = math.rsqrt %162 : vector<32x1xf32>
    %164 = vector.broadcast %163 : vector<32x1xf32> to vector<32x32xf32>
    %165 = arith.mulf %160, %164 : vector<32x32xf32>
    %c2_55 = arith.constant 2 : index
    %c0_56 = arith.constant 0 : index
    %c0_57 = arith.constant 0 : index
    %166 = vector.load %arg5[%c2_55, %c0_56, %c0_57] : memref<3x1x32xf32, #tpu.memory_space<vmem>>, vector<1x1x32xf32>
    %167 = vector.shape_cast %166 : vector<1x1x32xf32> to vector<1x32xf32>
    %168 = vector.broadcast %167 : vector<1x32xf32> to vector<32x32xf32>
    %169 = arith.mulf %165, %168 : vector<32x32xf32>
    %c2_58 = arith.constant 2 : index
    %c0_59 = arith.constant 0 : index
    %c0_60 = arith.constant 0 : index
    %170 = vector.load %arg6[%c2_58, %c0_59, %c0_60] : memref<3x1x32xf32, #tpu.memory_space<vmem>>, vector<1x1x32xf32>
    %171 = vector.shape_cast %170 : vector<1x1x32xf32> to vector<1x32xf32>
    %172 = vector.broadcast %171 : vector<1x32xf32> to vector<32x32xf32>
    %173 = arith.addf %169, %172 : vector<32x32xf32>
    %174 = vector.broadcast %14 : vector<32x1xf32> to vector<32x32xf32>
    %175 = arith.mulf %173, %174 : vector<32x32xf32>
    %cst_61 = arith.constant 0.000000e+00 : f32
    %176 = vector.broadcast %cst_61 : f32 to vector<32x32xf32>
    %177 = arith.maximumf %175, %176 : vector<32x32xf32>
    %c0_62 = arith.constant 0 : index
    %c0_63 = arith.constant 0 : index
    %178 = vector.load %arg7[%c0_62, %c0_63] : memref<1x32xf32, #tpu.memory_space<vmem>>, vector<1x32xf32>
    %179 = vector.broadcast %178 : vector<1x32xf32> to vector<32x32xf32>
    %180 = arith.mulf %177, %179 : vector<32x32xf32>
    %cst_64 = arith.constant dense<0.000000e+00> : vector<32xf32>
    %181 = vector.multi_reduction <add>, %180, %cst_64 [1] : vector<32x32xf32> to vector<32xf32>
    %182 = vector.shape_cast %181 : vector<32xf32> to vector<32x1xf32>
    %c0_65 = arith.constant 0 : index
    %c0_66 = arith.constant 0 : index
    %183 = memref.load %arg9[%c0_65, %c0_66] : memref<1x2xf32, #tpu.memory_space<smem>>
    %184 = vector.broadcast %183 : f32 to vector<32x1xf32>
    %185 = arith.addf %182, %184 : vector<32x1xf32>
    %cst_67 = arith.constant 0.000000e+00 : f32
    %186 = vector.broadcast %cst_67 : f32 to vector<32x1xf32>
    %187 = arith.cmpf ogt, %14, %186 : vector<32x1xf32>
    %cst_68 = arith.constant -1.000000e+30 : f32
    %188 = vector.broadcast %cst_68 : f32 to vector<32x1xf32>
    %189 = arith.select %187, %185, %188 : vector<32x1xi1>, vector<32x1xf32>
    %190 = vector.extract_strided_slice %189 {offsets = [0, 0], sizes = [16, 1], strides = [1, 1]} : vector<32x1xf32> to vector<16x1xf32>
    %191 = vector.extract_strided_slice %177 {offsets = [0, 0], sizes = [16, 32], strides = [1, 1]} : vector<32x32xf32> to vector<16x32xf32>
    %cst_69 = arith.constant dense<0xFF800000> : vector<1xf32>
    %192 = vector.multi_reduction <maximumf>, %190, %cst_69 [0] : vector<16x1xf32> to vector<1xf32>
    %193 = vector.shape_cast %192 : vector<1xf32> to vector<1x1xf32>
    %194 = vector.broadcast %193 : vector<1x1xf32> to vector<16x1xf32>
    %195 = arith.subf %190, %194 : vector<16x1xf32>
    %196 = math.exp %195 : vector<16x1xf32>
    %cst_70 = arith.constant dense<0.000000e+00> : vector<1xf32>
    %197 = vector.multi_reduction <add>, %196, %cst_70 [0] : vector<16x1xf32> to vector<1xf32>
    %198 = vector.shape_cast %197 : vector<1xf32> to vector<1x1xf32>
    %199 = vector.broadcast %198 : vector<1x1xf32> to vector<16x1xf32>
    %200 = arith.divf %196, %199 : vector<16x1xf32>
    %201 = vector.broadcast %200 : vector<16x1xf32> to vector<16x32xf32>
    %202 = arith.mulf %201, %191 : vector<16x32xf32>
    %cst_71 = arith.constant dense<0.000000e+00> : vector<32xf32>
    %203 = vector.multi_reduction <add>, %202, %cst_71 [0] : vector<16x32xf32> to vector<32xf32>
    %204 = vector.shape_cast %203 : vector<32xf32> to vector<1x32xf32>
    %c0_72 = arith.constant 0 : index
    %c0_73 = arith.constant 0 : index
    %205 = vector.load %arg8[%c0_72, %c0_73] : memref<1x32xf32, #tpu.memory_space<vmem>>, vector<1x32xf32>
    %206 = arith.mulf %204, %205 : vector<1x32xf32>
    %cst_74 = arith.constant dense<0.000000e+00> : vector<1xf32>
    %207 = vector.multi_reduction <add>, %206, %cst_74 [1] : vector<1x32xf32> to vector<1xf32>
    %208 = vector.shape_cast %207 : vector<1xf32> to vector<1x1xf32>
    %209 = vector.extract_strided_slice %189 {offsets = [16, 0], sizes = [16, 1], strides = [1, 1]} : vector<32x1xf32> to vector<16x1xf32>
    %210 = vector.extract_strided_slice %177 {offsets = [16, 0], sizes = [16, 32], strides = [1, 1]} : vector<32x32xf32> to vector<16x32xf32>
    %cst_75 = arith.constant dense<0xFF800000> : vector<1xf32>
    %211 = vector.multi_reduction <maximumf>, %209, %cst_75 [0] : vector<16x1xf32> to vector<1xf32>
    %212 = vector.shape_cast %211 : vector<1xf32> to vector<1x1xf32>
    %213 = vector.broadcast %212 : vector<1x1xf32> to vector<16x1xf32>
    %214 = arith.subf %209, %213 : vector<16x1xf32>
    %215 = math.exp %214 : vector<16x1xf32>
    %cst_76 = arith.constant dense<0.000000e+00> : vector<1xf32>
    %216 = vector.multi_reduction <add>, %215, %cst_76 [0] : vector<16x1xf32> to vector<1xf32>
    %217 = vector.shape_cast %216 : vector<1xf32> to vector<1x1xf32>
    %218 = vector.broadcast %217 : vector<1x1xf32> to vector<16x1xf32>
    %219 = arith.divf %215, %218 : vector<16x1xf32>
    %220 = vector.broadcast %219 : vector<16x1xf32> to vector<16x32xf32>
    %221 = arith.mulf %220, %210 : vector<16x32xf32>
    %cst_77 = arith.constant dense<0.000000e+00> : vector<32xf32>
    %222 = vector.multi_reduction <add>, %221, %cst_77 [0] : vector<16x32xf32> to vector<32xf32>
    %223 = vector.shape_cast %222 : vector<32xf32> to vector<1x32xf32>
    %c0_78 = arith.constant 0 : index
    %c0_79 = arith.constant 0 : index
    %224 = vector.load %arg8[%c0_78, %c0_79] : memref<1x32xf32, #tpu.memory_space<vmem>>, vector<1x32xf32>
    %225 = arith.mulf %223, %224 : vector<1x32xf32>
    %cst_80 = arith.constant dense<0.000000e+00> : vector<1xf32>
    %226 = vector.multi_reduction <add>, %225, %cst_80 [1] : vector<1x32xf32> to vector<1xf32>
    %227 = vector.shape_cast %226 : vector<1xf32> to vector<1x1xf32>
    %228 = tpu.concatenate %208, %227 in 0 : vector<1x1xf32>, vector<1x1xf32> -> vector<2x1xf32>
    %c0_81 = arith.constant 0 : index
    %c1_82 = arith.constant 1 : index
    %229 = memref.load %arg9[%c0_81, %c1_82] : memref<1x2xf32, #tpu.memory_space<smem>>
    %230 = vector.broadcast %229 : f32 to vector<2x1xf32>
    %231 = arith.addf %228, %230 : vector<2x1xf32>
    %232 = vector.shape_cast %231 : vector<2x1xf32> to vector<1x2x1xf32>
    %c0_83 = arith.constant 0 : index
    %c0_84 = arith.constant 0 : index
    %c0_85 = arith.constant 0 : index
    %233 = vector.load %arg10[%c0_83, %c0_84, %c0_85] : memref<1x2x1xf32, #tpu.memory_space<vmem>>, vector<1x2x1xf32>
    tpu.vector_store %arg10[%c0_83, %c0_84, %c0_85], %232 {strides = array<i32>} : memref<1x2x1xf32, #tpu.memory_space<vmem>>, vector<1x2x1xf32>,
    return
  }
  func.func @transform_0(%arg0: i32, %arg1: memref<2xi32, #tpu.memory_space<smem>>) -> (i32, i32) {
    %c0_i32 = arith.constant 0 : i32
    %c0_i32_0 = arith.constant 0 : i32
    return %arg0, %c0_i32 : i32, i32
  }
  func.func @transform_1(%arg0: i32, %arg1: memref<2xi32, #tpu.memory_space<smem>>) -> (i32, i32, i32) {
    %c0_i32 = arith.constant 0 : i32
    %c0_i32_0 = arith.constant 0 : i32
    %c0_i32_1 = arith.constant 0 : i32
    %c0_i32_2 = arith.constant 0 : i32
    return %c0_i32, %c0_i32_0, %c0_i32_1 : i32, i32, i32
  }
  func.func @transform_2(%arg0: i32, %arg1: memref<2xi32, #tpu.memory_space<smem>>) -> (i32, i32, i32) {
    %c0_i32 = arith.constant 0 : i32
    %c0_i32_0 = arith.constant 0 : i32
    %c0_i32_1 = arith.constant 0 : i32
    %c0_i32_2 = arith.constant 0 : i32
    return %c0_i32, %c0_i32_0, %c0_i32_1 : i32, i32, i32
  }
  func.func @transform_3(%arg0: i32, %arg1: memref<2xi32, #tpu.memory_space<smem>>) -> (i32, i32, i32) {
    %c0_i32 = arith.constant 0 : i32
    %c0_i32_0 = arith.constant 0 : i32
    %c0_i32_1 = arith.constant 0 : i32
    %c0_i32_2 = arith.constant 0 : i32
    return %c0_i32, %c0_i32_0, %c0_i32_1 : i32, i32, i32
  }
  func.func @transform_4(%arg0: i32, %arg1: memref<2xi32, #tpu.memory_space<smem>>) -> (i32, i32, i32) {
    %c0_i32 = arith.constant 0 : i32
    %c0_i32_0 = arith.constant 0 : i32
    %c0_i32_1 = arith.constant 0 : i32
    %c0_i32_2 = arith.constant 0 : i32
    return %c0_i32, %c0_i32_0, %c0_i32_1 : i32, i32, i32
  }
  func.func @transform_5(%arg0: i32, %arg1: memref<2xi32, #tpu.memory_space<smem>>) -> (i32, i32) {
    %c0_i32 = arith.constant 0 : i32
    %c0_i32_0 = arith.constant 0 : i32
    %c0_i32_1 = arith.constant 0 : i32
    return %c0_i32, %c0_i32_0 : i32, i32
  }
  func.func @transform_6(%arg0: i32, %arg1: memref<2xi32, #tpu.memory_space<smem>>) -> (i32, i32) {
    %c0_i32 = arith.constant 0 : i32
    %c0_i32_0 = arith.constant 0 : i32
    %c0_i32_1 = arith.constant 0 : i32
    return %c0_i32, %c0_i32_0 : i32, i32
  }
  func.func @transform_7(%arg0: i32, %arg1: memref<2xi32, #tpu.memory_space<smem>>) -> (i32, i32) {
    %c0_i32 = arith.constant 0 : i32
    %c0_i32_0 = arith.constant 0 : i32
    %c0_i32_1 = arith.constant 0 : i32
    return %c0_i32, %c0_i32_0 : i32, i32
  }
  func.func @transform_8(%arg0: i32, %arg1: memref<2xi32, #tpu.memory_space<smem>>) -> (i32, i32, i32) {
    %c0_i32 = arith.constant 0 : i32
    %c0_i32_0 = arith.constant 0 : i32
    %c0_i32_1 = arith.constant 0 : i32
    return %arg0, %c0_i32, %c0_i32_0 : i32, i32, i32
  }
}

</mosaic_0001>

<bundles_post_ra>
// kernel: adv_seq_discriminator.1
= control target key start
LH: loop header
LB: loop body
LE: loop exit
PB: predicated region body
PF: predicated region fallthrough
CT: control target
= control target key end

     0   :  { %s1924_s0 = inlined_call_operand.vmem [shape: s32[2], index: 0, kind: input, shape index: {}]   ;;  %s1925_s1 = inlined_call_operand.hbm [shape: f32[32,32], index: 1, kind: input, shape index: {}]   ;;  %s1926_s2 = inlined_call_operand.hbm [shape: f32[3,96,32], index: 2, kind: input, shape index: {}]   ;;  %s1927_s3 = inlined_call_operand.vmem [shape: f32[3,1,32], index: 3, kind: input, shape index: {}]   ;;  %s1928_s4 = inlined_call_operand.vmem [shape: f32[3,1,32], index: 4, kind: input, shape index: {}]   ;;  %s1929_s5 = inlined_call_operand.vmem [shape: f32[3,1,32], index: 5, kind: input, shape index: {}]   ;;  %s1930_s6 = inlined_call_operand.vmem [shape: f32[1,32], index: 6, kind: input, shape index: {}]   ;;  %s1931_s7 = inlined_call_operand.vmem [shape: f32[1,32], index: 7, kind: input, shape index: {}]   ;;  %s1932_s8 = inlined_call_operand.vmem [shape: f32[1,2], index: 8, kind: input, shape index: {}]   ;;  %s1933_s9 = inlined_call_operand.vmem [shape: f32[1,2,1], index: 9, kind: output, shape index: {}]  }
   0x1   :  { %s14_s11 = sshll.u32 %s1924_s0, 4  ;;  %s15_s11 = int_to_ptr.vmem [resolvable:$true] %s14_s11 }
   0x2   :  { %s1454_s12 = scalar_lea.vmem %s15_s11, 16  ;;  %p1459_p1 = scmp.lt.s32.totalorder %s15_s11, %s15_s11 }
   0x3   :  { %p1455_p0 = scmp.ne.s32.totalorder %s15_s11, %s1454_s12  ;;  %p1460_p2 = scmp.lt.s32.totalorder %s1454_s12, %s1454_s12 }
   0x5   :  { %p1461_p3 = por %p1460_p2, %p1459_p1 }
   0x7   :  { %p1462_p4 = pnand %p1461_p3, %p1455_p0 }
   0x9   :  { %1465 = shalt.err (!%p1462_p4)  }
   0xa   :  { %s1530_s13 = smov [#allocation3]  }
   0xb   :  { %17 = dma.vmem_to_smem %s15_s11, 16, %s1530_s13, [#allocation2] }
   0xc   :  { %1522 = dma.done.wait [#allocation2], 16 }
   0xd   :  { %1523 = vsyncadd [#allocation2], 4294967280 }
   0xe   :  { %19 = sfence }
   0xf   :  { %20 = vsyncpa [#allocation5], 0 }
  0x10   :  { %21 = vsyncpa [#allocation8], 0 }
  0x11   :  { %22 = vsyncpa [#allocation6], 0  ;;  %s1531_s14 = smov [#allocation4]   ;;  %s1466_s17 = scalar_lea.hbm %s1925_s1, 512 }
  0x12   :  { %s28_s15 = sshll.u32 %s1531_s14, 4  ;;  %p1467_p5 = scmp.ne.s32.totalorder %s1925_s1, %s1466_s17  ;;  %s29_s15 = int_to_ptr.vmem [resolvable:$true] %s28_s15 }
  0x13   :  { %p1470_p6 = scmp.lt.u32.totalorder %s1466_s17, %s1925_s1 }
  0x15   :  { %p1472_p7 = pnand %p1470_p6, %p1467_p5 }
  0x17   :  { %1475 = shalt.err (!%p1472_p7)
}
  0x18   :  { %s1476_s22 = scalar_lea.vmem %s29_s15, 512  ;;  %p1481_p9 = scmp.lt.s32.totalorder %s29_s15, %s29_s15 }
  0x19   :  { %p1477_p8 = scmp.ne.s32.totalorder %s29_s15, %s1476_s22  ;;  %p1482_p10 = scmp.lt.s32.totalorder %s1476_s22, %s1476_s22 }
  0x1b   :  { %p1483_p11 = por %p1482_p10, %p1481_p9 }
  0x1d   :  { %p1484_p12 = pnand %p1483_p11, %p1477_p8 }
  0x1f   :  { %1487 = shalt.err (!%p1484_p12)
}
  0x20   :  { %s1532_s23 = smov 128   ;;  %s1533_s24 = smov 8  }
  0x21   :  { %34 = dma.hbm_to_vmem [thread:$0]  %s1925_s1, 512, %s29_s15, [#allocation5], %s1532_s23, %s1532_s23, %s1533_s24  }
  0x22   :  { %s1534_s27 = smov [#allocation7]   ;;  %s63_s10 = sshll.u32 %s1932_s8, 4  ;;  %s64_s10 = int_to_ptr.vmem [resolvable:$true] %s63_s10 }
  0x23   :  { %s40_s28 = sshll.u32 %s1534_s27, 4  ;;  %s1488_s13 = scalar_lea.hbm %s1926_s2, 4608  ;;  %s41_s28 = int_to_ptr.vmem [resolvable:$true] %s40_s28 }
  0x24   :  { %p1489_p13 = scmp.ne.s32.totalorder %s1926_s2, %s1488_s13  ;;  %p1492_p0 = scmp.lt.u32.totalorder %s1488_s13, %s1926_s2 }
  0x26   :  { %p1494_p1 = pnand %p1492_p0, %p1489_p13 }
  0x28   :  { %1497 = shalt.err (!%p1494_p1)
}
  0x29   :  { %s1498_s1 = scalar_lea.vmem %s41_s28, 4608  ;;  %p1503_p3 = scmp.lt.s32.totalorder %s41_s28, %s41_s28 }
  0x2a   :  { %p1499_p2 = scmp.ne.s32.totalorder %s41_s28, %s1498_s1  ;;  %p1504_p4 = scmp.lt.s32.totalorder %s1498_s1, %s1498_s1 }
  0x2c   :  { %p1505_p5 = por %p1504_p4, %p1503_p3 }
  0x2e   :  { %p1506_p6 = pnand %p1505_p5, %p1499_p2 }
  0x30   :  { %1509 = shalt.err (!%p1506_p6)
}
  0x31   :  { %46 = dma.hbm_to_vmem [thread:$0]  %s1926_s2, 4608, %s41_s28, [#allocation8], %s1532_s23, %s1532_s23, %s1533_s24  }
  0x32   :  { %s1510_s18 = scalar_lea.vmem %s64_s10, 16  ;;  %p1515_p8 = scmp.lt.s32.totalorder %s64_s10, %s64_s10 }
  0x33   :  { %p1511_p7 = scmp.ne.s32.totalorder %s64_s10, %s1510_s18  ;;  %p1516_p9 = scmp.lt.s32.totalorder %s1510_s18, %s1510_s18 }
  0x35   :  { %p1517_p10 = por %p1516_p9, %p1515_p8 }
  0x37   :  { %p1518_p11 = pnand %p1517_p10, %p1511_p7 }
  0x39   :  { %1521 = shalt.err (!%p1518_p11)
}
  0x3a   :  { %s1535_s19 = smov [#allocation9]  }
  0x3b   :  { %66 = dma.vmem_to_smem %s64_s10, 16, %s1535_s19, [#allocation6]  }
  0x3c   :  { %1524 = dma.done.wait [#allocation5], 512  }
  0x3d   :  { %1525 = vsyncadd [#allocation5], 4294966784 }
  0x3e   :  { %1526 = dma.done.wait [#allocation8], 4608  }
  0x3f   :  { %1527 = vsyncadd [#allocation8], 4294962688 }
  0x40   :  { %1528 = dma.done.wait [#allocation6], 16  }
  0x41   :  { %1529 = vsyncadd [#allocation6], 4294967280 }
  0x42   :  { %76 = sfence }
  0x43   :  { %v78_v0 = vlaneseq  ;;  %s81_s20 = sld [smem:[#allocation3]]  ;;  %s1140_s21 = sld [smem:[#allocation3 + $0x1]]  ;;  %v1536_v1 = vmov 0   ;;  %v1537_v7 = vmov 0.0   ;;  %v228_v15 = vld [vmem:[#allocation7] sm:$0xff]  ;;  %v229_v16 = vld [vmem:[#allocation7 + $0x8] sm:$0xff] }
  0x44   :  { %1417 = vset.pattern.permute.xlu1 %v1536_v1  ;;  %1406 = vset.pattern.permute.xlu0 %v1536_v1  ;;  %v230_v17 = vld [vmem:[#allocation7 + $0x10] sm:$0xff]  ;;  %v1312_v18 = vpack.c.bf16 %v229_v16, %v228_v15  ;;  %v231_v19 = vld [vmem:[#allocation7 + $0x18] sm:$0xff]  ;;  %v232_v21 = vld [vmem:[#allocation7 + $0x20] sm:$0xff]  ;;  %vm136_vm6 = vcmask 1040384   ;;  %s1538_s2 = smov 32   ;;  %vm162_vm7 = vcmask 1046528  }
  0x45   :  { %179 = vperm.xlu1 %1417, %v1536_v1   ;;  %v79_v2 = vshrl.u32 %v78_v0, 7  ;;  %v1316_v20 = vpack.c.bf16 %v231_v19, %v230_v17  ;;  %v233_v22 = vld [vmem:[#allocation7 + $0x28] sm:$0xff]  ;;  %v234_v24 = vld [vmem:[#allocation7 + $0x30] sm:$0xff]  ;;  %v235_v25 = vld [vmem:[#allocation7 + $0x38] sm:$0xff]  ;;  %s1539_s22 = smov 64   ;;  %vm218_vm11 = vcmask 261120  }
  0x46   :  { %1313 = vmatprep.subr.bf16.mxu0 %v1312_v18  ;;  %v1320_v23 = vpack.c.bf16 %v233_v22, %v232_v21  ;;  %v1324_v26 = vpack.c.bf16 %v235_v25, %v234_v24  ;;  %v236_v27 = vld [vmem:[#allocation7 + $0x40] sm:$0xff]  ;;  %v237_v28 = vld [vmem:[#allocation7 + $0x48] sm:$0xff]  ;;  %v238_v30 = vld [vmem:[#allocation7 + $0x50] sm:$0xff]  ;;  %vm223_vm13 = vcmask 523264   ;;  %vm247_vm14 = vcmask 785408   ;;  %s1173_s18 = sld [smem:[#allocation9 + $0x1]] }
  0x47   :  { %v80_v3 = vadd.s32 8, %v79_v2  ;;  %vm98_vm5 = vcmp.eq.s32.totalorder %v79_v2, 0  ;;  %1315 = vmatpush3.bf16.msra.mxu0 %v1312_v18  ;;  %v1328_v29 = vpack.c.bf16 %v237_v28, %v236_v27  ;;  %v239_v31 = vld [vmem:[#allocation7 + $0x58] sm:$0xff]  ;;  %v103_v34 = vld [vmem:[#allocation4 + $0x8] sm:$0xff]  ;;  %v102_v35 = vld [vmem:[#allocation4] sm:$0xff] }
  0x48   :  { %v148_v14 = vsel %vm98_vm5, 1, %v1536_v1  ;;  %1317 = vmatprep.subr.bf16.mxu0 %v1316_v20  ;;  %v1332_v32 = vpack.c.bf16 %v239_v31, %v238_v30  ;;  %v105_v42 = vld [vmem:[#allocation4 + $0x18] sm:$0xff]  ;;  %v104_v43 = vld [vmem:[#allocation4 + $0x10] sm:$0xff]  ;;  %v1145_v31 = vld [vmem:[%s1927_s3] ss:$0 sm:$0xff]  ;;  %vm1131_vm5 = vcmask 1024  }
  0x49   :  { %v82_v4 = vstv %s81_s20  ;;  %vm101_vm0 = vcmp.eq.s32.totalorder %v80_v3, 15  ;;  %v85_v5 = vstv %s1140_s21 }
  0x4a   :  { %vm86_vm1 = vcmp.lt.s32.totalorder %v79_v2, %v82_v4  ;;  %vm87_vm2 = vcmp.lt.s32.totalorder %v80_v3, %v82_v4  ;;  %v177_v6 = vsel %vm101_vm0, 1, %v1536_v1  ;;  %vm88_vm3 = vcmp.lt.s32.totalorder %v79_v2, %v85_v5 }
  0x4b   :  { %v1620_v8 = vsel %vm86_vm1, 1.0, %v1537_v7  ;;  %v1622_v9 = vsel %vm87_vm2, 1.0, %v1537_v7  ;;  %182 = vperm.xlu1 %1417, %v177_v6   ;;  %vm89_vm4 = vcmp.lt.s32.totalorder %v80_v3, %v85_v5  ;;  %v1624_v10 = vsel %vm88_vm3, 1.0, %v1537_v7  ;;  %1319 = vmatpush3.bf16.msra.mxu0 %v1316_v20 }
  0x4c   :  { %v1407_v11 = vpack.i.bf16 %v1622_v9, %v1620_v8  ;;  %v1628_v12 = vsel %vm89_vm4, 1.0, %v1537_v7  ;;  %1321 = vmatprep.subr.bf16.mxu0 %v1320_v23  ;;  %vm1011_vm0 = vcmp.gt.f32.partialorder %v1624_v10, 0.0  ;;  %vm1017_vm1 = vcmask 7168  }
  0x4d   :  { %v1412_v13 = vpack.i.bf16 %v1628_v12, %v1624_v10  ;;  %vm1012_vm15 = vcmp.gt.f32.partialorder %v1628_v12, 0.0  ;;  %vm1009_vm2 = vcmp.gt.f32.partialorder %v1620_v8, 0.0  ;;  %vm1010_vm3 = vcmp.gt.f32.partialorder %v1622_v9, 0.0 }
  0x4e   :  { %1408 = vperm.xlu0 %1406, %v1407_v11   ;;  %vm1068_vm4 = vcmask 253952  }
  0x4f   :  { %154 = vperm.xlu1 %1417, %v1536_v1   ;;  %1323 = vmatpush3.bf16.msra.mxu0 %v1320_v23 }
  0x50   :  { %1325 = vmatprep.subr.bf16.mxu0 %v1324_v26 }
  0x52   :  { %1413 = vperm.xlu0 %1406, %v1412_v13  }
  0x53   :  { %1327 = vmatpush3.bf16.msra.mxu0 %v1324_v26 }
  0x54   :  { %1329 = vmatprep.subr.bf16.mxu0 %v1328_v29 }
  0x56   :  { %151 = vperm.xlu0 %1406, %v148_v14  }
  0x57   :  { %1331 = vmatpush3.bf16.msra.mxu0 %v1328_v29 }
  0x58   :  { %1333 = vmatprep.subr.bf16.mxu0 %v1332_v32 }
  0x5b   :  { %1335 = vmatpush3.bf16.msra.mxu0 %v1332_v32 }
  0xc4   :  { %v1636_v38 = vpop.permute.xlu1 %179 }
  0xc5   :  { %vm184_vm8 = vcmp.eq.s32.totalorder %v1636_v38, 1 }
  0xca   :  { %v1650_v53 = vpop.permute.xlu1 %182 }
  0xcb   :  { %vm185_vm9 = vcmp.eq.s32.totalorder %v1650_v53, 1 }
  0xcd   :  { %v1409_v33 = vpop.permute.xlu0 %1408 }
  0xce   :  { %v1632_v36 = vunpack.i.h.bf16 %v1409_v33  ;;  %v1634_v37 = vunpack.i.l.bf16 %v1409_v33  ;;  %v1674_v5 = vpop.permute.xlu1 %154 }
  0xcf   :  { %vm157_vm10 = vcmp.eq.s32.totalorder %v1674_v5, 1 }
  0xd0   :  { %v127_v39 = vmul.f32 %v1632_v36, %v103_v34  ;;  %v126_v40 = vmul.f32 %v1634_v37, %v102_v35 }
  0xd1   :  { %v1414_v41 = vpop.permute.xlu0 %1413 }
  0xd2   :  { %v1640_v44 = vunpack.i.h.bf16 %v1414_v41  ;;  %v1642_v45 = vunpack.i.l.bf16 %v1414_v41  ;;  %192 = vrot.lane.b32.xlu1 %v127_v39, %s1538_s2  ;;  %v138_v46 = vrot.slane %v127_v39, 7  ;;  %190 = vrot.lane.b32.xlu0 %v126_v40, %s1538_s2  ;;  %v137_v47 = vrot.slane %v126_v40, 7 }
  0xd3   :  { %v164_v48 = vrot.slane %v127_v39, 1  ;;  %v163_v49 = vrot.slane %v126_v40, 1 }
  0xd4   :  { %v129_v50 = vmul.f32 %v1640_v44, %v105_v42  ;;  %v128_v51 = vmul.f32 %v1642_v45, %v104_v43  ;;  %v139_v52 = vsel %vm136_vm6, %v137_v47, %v138_v46 }
  0xd5   :  { %v165_v57 = vsel %vm162_vm7, %v163_v49, %v164_v48  ;;  %v1676_v6 = vpop.permute.xlu0 %151  ;;  %v159_v15 = vsel %vm157_vm10, 0.0, %v139_v52 }
  0xd6   :  { %v131_v54 = vrot.slane %v129_v50, 7  ;;  %196 = vrot.lane.b32.xlu1 %v129_v50, %s1538_s2  ;;  %v140_v55 = vrot.slane %v128_v51, 7  ;;  %194 = vrot.lane.b32.xlu0 %v128_v51, %s1538_s2  ;;  %v166_v56 = vrot.slane %v128_v51, 1  ;;  %v168_v58 = vrot.slane %v129_v50, 1 }
  0xd7   :  { %v186_v0 = vsel %vm184_vm8, 0.0, %v165_v57  ;;  %vm156_vm12 = vcmp.eq.s32.totalorder %v1676_v6, 1 }
  0xd8   :  { %v167_v59 = vsel %vm162_vm7, %v164_v48, %v166_v56  ;;  %v147_v60 = vsel %vm136_vm6, %v131_v54, %v137_v47  ;;  %v142_v61 = vsel %vm136_vm6, %v140_v55, %v131_v54  ;;  %v141_v62 = vsel %vm136_vm6, %v138_v46, %v140_v55 }
  0xd9   :  { %v187_v63 = vsel %vm185_vm9, 0.0, %v167_v59  ;;  %v175_v1 = vsel %vm162_vm7, %v168_v58, %v163_v49  ;;  %v169_v2 = vsel %vm162_vm7, %v166_v56, %v168_v58  ;;  %v158_v16 = vsel %vm156_vm12, 0.0, %v147_v60 }
  0xda   :  { %208 = vrot.lane.b32.xlu1 %v187_v63, %s1539_s22  ;;  %206 = vrot.lane.b32.xlu0 %v186_v0, %s1539_s22  ;;  %v189_v3 = vsel %vm185_vm9, 0.0, %v175_v1  ;;  %v188_v4 = vsel %vm184_vm8, 0.0, %v169_v2  ;;  %v161_v23 = vsel %vm157_vm10, 0.0, %v142_v61  ;;  %v160_v24 = vsel %vm156_vm12, 0.0, %v141_v62 }
  0xde   :  { %212 = vrot.lane.b32.xlu1 %v189_v3, %s1539_s22  ;;  %210 = vrot.lane.b32.xlu0 %v188_v4, %s1539_s22 }
 0x144   :  { %v193_v7 = vpop.permute.xlu1 %192  ;;  %v191_v11 = vpop.permute.xlu0 %190 }
 0x145   :  { %v220_v17 = vsel %vm218_vm11, %v159_v15, %v193_v7  ;;  %v219_v18 = vsel %vm218_vm11, %v158_v16, %v191_v11  ;;  %v503_v11 = vld [vmem:[#allocation7 + $0x60] sm:$0xff]  ;;  %v506_v16 = vld [vmem:[#allocation7 + $0x78] sm:$0xff] }
 0x148   :  { %v197_v13 = vpop.permute.xlu1 %196  ;;  %v195_v14 = vpop.permute.xlu0 %194 }
 0x149   :  { %v222_v25 = vsel %vm218_vm11, %v161_v23, %v197_v13  ;;  %v221_v26 = vsel %vm218_vm11, %v160_v24, %v195_v14  ;;  %v504_v13 = vld [vmem:[#allocation7 + $0x68] sm:$0xff]  ;;  %v505_v14 = vld [vmem:[#allocation7 + $0x70] sm:$0xff] }
 0x14a   :  { %v1336_v15 = vpack.c.bf16 %v504_v13, %v503_v11 }
 0x14c   :  { %v209_v19 = vpop.permute.xlu1 %208  ;;  %v207_v20 = vpop.permute.xlu0 %206  ;;  %1337 = vmatprep.subr.bf16.mxu1 %v1336_v15 }
 0x14d   :  { %v225_v21 = vsel %vm223_vm13, %v220_v17, %v209_v19  ;;  %v224_v22 = vsel %vm223_vm13, %v219_v18, %v207_v20  ;;  %v1340_v17 = vpack.c.bf16 %v506_v16, %v505_v14  ;;  %1339 = vmatpush3.bf16.msra.mxu1 %v1336_v15 }
 0x14e   :  { %1246 = vmatprep.mubr.msk.f32.mxu0 %vm247_vm14, %v224_v22 }
 0x14f   :  { %1247 = vmatmul.mubr.msk.f32.vlgmr.msra.gmra.mrb[0].mxu0 %vm247_vm14, %v225_v21  ;;  %1341 = vmatprep.subr.bf16.mxu1 %v1340_v17 }
 0x150   :  { %v213_v27 = vpop.permute.xlu1 %212  ;;  %v211_v28 = vpop.permute.xlu0 %210 }
 0x151   :  { %v227_v29 = vsel %vm223_vm13, %v222_v25, %v213_v27  ;;  %v226_v30 = vsel %vm223_vm13, %v221_v26, %v211_v28  ;;  %1343 = vmatpush3.bf16.msra.mxu1 %v1340_v17 }
 0x152   :  { %1249 = vmatprep.mubr.msk.f32.mxu0 %vm247_vm14, %v226_v30  ;;  %v507_v30 = vld [vmem:[#allocation7 + $0x80] sm:$0xff] }
 0x153   :  { %1250 = vmatmul.mubr.msk.f32.gmra.mrb[2].mxu0 %vm247_vm14, %v227_v29 }
 0x222   :  { %v1248_v32 = vpop.f32.mrb[0].mxu0 }
 0x223   :  { %v332_v33 = vadd.f32 %v1248_v32, %v1145_v31  ;;  %v326_v34 = vpop.f32.mrb[1].mxu0 }
 0x224   :  { %v327_v35 = vadd.f32 %v1145_v31, %v326_v34 }
 0x225   :  { %v348_v39 = vsel %vm218_vm11, %v332_v33, 0.0 }
 0x226   :  { %349 = vadd.xlane.f32.xlu1 %v348_v39  ;;  %v1251_v40 = vpop.f32.mrb[2].mxu0  ;;  %v345_v41 = vsel %vm218_vm11, %v327_v35, 0.0 }
 0x227   :  { %v336_v42 = vpop.f32.mrb[3].mxu0  ;;  %346 = vadd.xlane.f32.xlu0 %v345_v41  ;;  %v342_v46 = vadd.f32 %v1251_v40, %v1145_v31  ;;  %v1151_v40 = vld [vmem:[%s1929_s5] ss:$0 sm:$0xff] }
 0x228   :  { %v337_v43 = vadd.f32 %v1145_v31, %v336_v42  ;;  %v508_v31 = vld [vmem:[#allocation7 + $0x88] sm:$0xff] }
 0x229   :  { %v354_v48 = vsel %vm218_vm11, %v342_v46, 0.0  ;;  %v1344_v34 = vpack.c.bf16 %v508_v31, %v507_v30 }
 0x22a   :  { %v351_v47 = vsel %vm218_vm11, %v337_v43, 0.0 }
 0x22b   :  { %352 = vadd.xlane.f32.xlu0 %v351_v47  ;;  %1345 = vmatprep.subr.bf16.mxu1 %v1344_v34 }
 0x22c   :  { %1347 = vmatpush3.bf16.msra.mxu1 %v1344_v34 }
 0x22f   :  { %355 = vadd.xlane.f32.xlu0 %v354_v48 }
 0x2b3   :  { %v350_v49 = vpop.xlane.xlu1 %349 }
 0x2b4   :  { %v359_v50 = vmul.f32 0.03125, %v350_v49  ;;  %v347_v51 = vpop.xlane.xlu0 %346 }
 0x2b5   :  { %v358_v52 = vmul.f32 0.03125, %v347_v51 }
 0x2b6   :  { %v363_v54 = vsub.f32 %v332_v33, %v359_v50  ;;  %v1150_v33 = vld [vmem:[%s1928_s4] ss:$0 sm:$0xff] }
 0x2b7   :  { %v362_v55 = vsub.f32 %v327_v35, %v358_v52 }
 0x2b8   :  { %v353_v56 = vpop.xlane.xlu0 %352  ;;  %v367_v57 = vmul.f32 %v363_v54, %v363_v54 }
 0x2b9   :  { %v360_v58 = vmul.f32 0.03125, %v353_v56  ;;  %v366_v59 = vmul.f32 %v362_v55, %v362_v55 }
 0x2ba   :  { %v373_v60 = vsel %vm218_vm11, %v367_v57, 0.0  ;;  %v512_v57 = vld [vmem:[#allocation7 + $0xa8] sm:$0xff] }
 0x2bb   :  { %v364_v61 = vsub.f32 %v337_v43, %v360_v58  ;;  %374 = vadd.xlane.f32.xlu0 %v373_v60  ;;  %v370_v62 = vsel %vm218_vm11, %v366_v59, 0.0  ;;  %v509_v43 = vld [vmem:[#allocation7 + $0x90] sm:$0xff] }
 0x2bc   :  { %371 = vadd.xlane.f32.xlu1 %v370_v62  ;;  %v356_v63 = vpop.xlane.xlu0 %355 }
 0x2bd   :  { %v361_v0 = vmul.f32 0.03125, %v356_v63  ;;  %v368_v1 = vmul.f32 %v364_v61, %v364_v61 }
 0x2bf   :  { %v1709_v2 = vsub.f32 %v342_v46, %v361_v0  ;;  %v376_v3 = vsel %vm218_vm11, %v368_v1, 0.0  ;;  %v510_v46 = vld [vmem:[#allocation7 + $0x98] sm:$0xff] }
 0x2c0   :  { %377 = vadd.xlane.f32.xlu1 %v376_v3  ;;  %v1348_v48 = vpack.c.bf16 %v510_v46, %v509_v43  ;;  %v513_v3 = vld [vmem:[#allocation7 + $0xb0] sm:$0xff] }
 0x2c1   :  { %v369_v4 = vmul.f32 %v1709_v2, %v1709_v2 }
 0x2c2   :  { %1349 = vmatprep.subr.bf16.mxu1 %v1348_v48 }
 0x2c3   :  { %v379_v7 = vsel %vm218_vm11, %v369_v4, 0.0  ;;  %1351 = vmatpush3.bf16.msra.mxu1 %v1348_v48  ;;  %v514_v4 = vld [vmem:[#allocation7 + $0xb8] sm:$0xff] }
 0x2c4   :  { %380 = vadd.xlane.f32.xlu0 %v379_v7  ;;  %v1356_v14 = vpack.c.bf16 %v514_v4, %v513_v3 }
 0x348   :  { %v375_v18 = vpop.xlane.xlu0 %374 }
 0x349   :  { %v383_v19 = vmul.f32 0.03125, %v375_v18  ;;  %v372_v20 = vpop.xlane.xlu1 %371 }
 0x34a   :  { %v382_v21 = vmul.f32 0.03125, %v372_v20 }
 0x34b   :  { %v387_v22 = vadd.f32 1e-05, %v383_v19 }
 0x34c   :  { %v386_v23 = vadd.f32 1e-05, %v382_v21 }
 0x34d   :  { %1418 = vrsqrt.f32 %v387_v22  ;;  %v378_v24 = vpop.xlane.xlu1 %377 }
 0x34e   :  { %1420 = vrsqrt.f32 %v386_v23  ;;  %v384_v25 = vmul.f32 0.03125, %v378_v24 }
 0x350   :  { %v388_v26 = vadd.f32 1e-05, %v384_v25 }
 0x351   :  { %v381_v27 = vpop.xlane.xlu0 %380 }
 0x352   :  { %1422 = vrsqrt.f32 %v388_v26  ;;  %v385_v28 = vmul.f32 0.03125, %v381_v27 }
 0x354   :  { %v389_v29 = vadd.f32 1e-05, %v385_v28 }
 0x356   :  { %1424 = vrsqrt.f32 %v389_v29 }
 0x357   :  { %v1419_v32 = vpop.eup %1418 }
 0x358   :  { %v1421_v35 = vpop.eup %1420  ;;  %v395_v39 = vmul.f32 %v1419_v32, %v363_v54  ;;  %v511_v54 = vld [vmem:[#allocation7 + $0xa0] sm:$0xff] }
 0x359   :  { %v394_v41 = vmul.f32 %v1421_v35, %v362_v55  ;;  %v1352_v59 = vpack.c.bf16 %v512_v57, %v511_v54 }
 0x35a   :  { %v406_v42 = vmul.f32 %v1150_v33, %v395_v39 }
 0x35b   :  { %v405_v47 = vmul.f32 %v1150_v33, %v394_v41  ;;  %1353 = vmatprep.subr.bf16.mxu1 %v1352_v59 }
 0x35c   :  { %v1423_v49 = vpop.eup %1422  ;;  %v417_v50 = vadd.f32 %v1151_v40, %v406_v42  ;;  %1355 = vmatpush3.bf16.msra.mxu1 %v1352_v59 }
 0x35d   :  { %v416_v51 = vadd.f32 %v1151_v40, %v405_v47  ;;  %v396_v52 = vmul.f32 %v1423_v49, %v364_v61  ;;  %1357 = vmatprep.subr.bf16.mxu1 %v1356_v14 }
 0x35e   :  { %v421_v56 = vmul.f32 %v1632_v36, %v417_v50 }
 0x35f   :  { %v420_v58 = vmul.f32 %v1634_v37, %v416_v51  ;;  %v407_v55 = vmul.f32 %v1150_v33, %v396_v52 }
 0x360   :  { %v1425_v60 = vpop.eup %1424  ;;  %v425_v62 = vmax.f32 %v421_v56, 0.0  ;;  %1359 = vmatpush3.bf16.msra.mxu1 %v1356_v14 }
 0x361   :  { %v424_v63 = vmax.f32 %v420_v58, 0.0  ;;  %v418_v0 = vadd.f32 %v1151_v40, %v407_v55  ;;  %v397_v1 = vmul.f32 %v1425_v60, %v1709_v2 }
 0x362   :  { %468 = vrot.lane.b32.xlu0 %v425_v62, %s1538_s2  ;;  %v435_v61 = vrot.slane %v425_v62, 7  ;;  %v450_v20 = vrot.slane %v425_v62, 1 }
 0x363   :  { %v434_v7 = vrot.slane %v424_v63, 7  ;;  %466 = vrot.lane.b32.xlu1 %v424_v63, %s1538_s2  ;;  %v422_v11 = vmul.f32 %v1642_v45, %v418_v0  ;;  %v408_v13 = vmul.f32 %v1150_v33, %v397_v1  ;;  %v449_v19 = vrot.slane %v424_v63, 1  ;;  %v1153_v63 = vld [vmem:[%s1927_s3 + $0x1] ss:$0 sm:$0xff] }
 0x365   :  { %v426_v15 = vmax.f32 %v422_v11, 0.0  ;;  %v419_v16 = vadd.f32 %v1151_v40, %v408_v13  ;;  %v436_v17 = vsel %vm136_vm6, %v434_v7, %v435_v61  ;;  %v451_v24 = vsel %vm162_vm7, %v449_v19, %v450_v20 }
 0x366   :  { %v462_v30 = vsel %vm184_vm8, 0.0, %v451_v24  ;;  %v446_v49 = vsel %vm157_vm10, 0.0, %v436_v17 }
 0x367   :  { %v437_v2 = vrot.slane %v426_v15, 7  ;;  %470 = vrot.lane.b32.xlu0 %v426_v15, %s1538_s2  ;;  %v423_v18 = vmul.f32 %v1640_v44, %v419_v16  ;;  %v452_v25 = vrot.slane %v426_v15, 1 }
 0x369   :  { %v427_v21 = vmax.f32 %v423_v18, 0.0  ;;  %v438_v22 = vsel %vm136_vm6, %v435_v61, %v437_v2  ;;  %v453_v32 = vsel %vm162_vm7, %v450_v20, %v452_v25 }
 0x36a   :  { %v463_v33 = vsel %vm185_vm9, 0.0, %v453_v32  ;;  %v447_v52 = vsel %vm156_vm12, 0.0, %v438_v22 }
 0x36b   :  { %472 = vrot.lane.b32.xlu1 %v427_v21, %s1538_s2  ;;  %v429_v23 = vrot.slane %v427_v21, 7  ;;  %v454_v26 = vrot.slane %v427_v21, 1 }
 0x36d   :  { %v455_v27 = vsel %vm162_vm7, %v452_v25, %v454_v26  ;;  %v444_v28 = vsel %vm136_vm6, %v429_v23, %v434_v7  ;;  %v439_v29 = vsel %vm136_vm6, %v437_v2, %v429_v23  ;;  %v461_v34 = vsel %vm162_vm7, %v454_v26, %v449_v19 }
 0x36e   :  { %v464_v31 = vsel %vm184_vm8, 0.0, %v455_v27  ;;  %v465_v35 = vsel %vm185_vm9, 0.0, %v461_v34  ;;  %v445_v42 = vsel %vm156_vm12, 0.0, %v444_v28  ;;  %v448_v55 = vsel %vm157_vm10, 0.0, %v439_v29 }
 0x36f   :  { %482 = vrot.lane.b32.xlu1 %v462_v30, %s1539_s22  ;;  %486 = vrot.lane.b32.xlu0 %v464_v31, %s1539_s22 }
 0x373   :  { %484 = vrot.lane.b32.xlu1 %v463_v33, %s1539_s22 }
 0x377   :  { %488 = vrot.lane.b32.xlu1 %v465_v35, %s1539_s22 }
 0x3d4   :  { %v469_v40 = vpop.permute.xlu0 %468 }
 0x3d5   :  { %v467_v39 = vpop.permute.xlu1 %466  ;;  %v495_v51 = vsel %vm218_vm11, %v446_v49, %v469_v40  ;;  %v779_v40 = vld [vmem:[#allocation7 + $0xc0] sm:$0xff] }
 0x3d6   :  { %v494_v46 = vsel %vm218_vm11, %v445_v42, %v467_v39  ;;  %v781_v42 = vld [vmem:[#allocation7 + $0xd0] sm:$0xff] }
 0x3d9   :  { %v471_v43 = vpop.permute.xlu0 %470 }
 0x3da   :  { %v496_v54 = vsel %vm218_vm11, %v447_v52, %v471_v43 }
 0x3dd   :  { %v473_v41 = vpop.permute.xlu1 %472 }
 0x3de   :  { %v497_v59 = vsel %vm218_vm11, %v448_v55, %v473_v41  ;;  %v780_v41 = vld [vmem:[#allocation7 + $0xc8] sm:$0xff] }
 0x3df   :  { %v1360_v43 = vpack.c.bf16 %v780_v41, %v779_v40  ;;  %v789_v40 = vld [vmem:[#allocation7 + $0x110] sm:$0xff]  ;;  %v790_v41 = vld [vmem:[#allocation7 + $0x118] sm:$0xff] }
 0x3e1   :  { %v483_v47 = vpop.permute.xlu1 %482  ;;  %v487_v50 = vpop.permute.xlu0 %486  ;;  %1384 = vmatprep.subr.bf16.mxu1 %v1360_v43  ;;  %1361 = vmatprep.subr.bf16.mxu0 %v1360_v43 }
 0x3e2   :  { %v498_v48 = vsel %vm223_vm13, %v494_v46, %v483_v47  ;;  %v500_v58 = vsel %vm223_vm13, %v496_v54, %v487_v50  ;;  %v782_v46 = vld [vmem:[#allocation7 + $0xd8] sm:$0xff]  ;;  %1363 = vmatpush3.bf16.msra.mxu0 %v1360_v43 }
 0x3e3   :  { %1276 = vmatprep.mubr.msk.f32.mxu1 %vm247_vm14, %v498_v48  ;;  %v1364_v47 = vpack.c.bf16 %v782_v46, %v781_v42 }
 0x3e5   :  { %v485_v56 = vpop.permute.xlu1 %484  ;;  %1365 = vmatprep.subr.bf16.mxu0 %v1364_v47 }
 0x3e6   :  { %v499_v57 = vsel %vm223_vm13, %v495_v51, %v485_v56  ;;  %1367 = vmatpush3.bf16.msra.mxu0 %v1364_v47 }
 0x3e7   :  { %1277 = vmatmul.mubr.msk.f32.vlgmr.msra.gmra.mrb[0].mxu1 %vm247_vm14, %v499_v57 }
 0x3e8   :  { %1279 = vmatprep.mubr.msk.f32.mxu1 %vm247_vm14, %v500_v58  ;;  %1390 = vmatpush3.bf16.msra.mxu1 %v1360_v43  ;;  %v1380_v43 = vpack.c.bf16 %v790_v41, %v789_v40 }
 0x3e9   :  { %v489_v60 = vpop.permute.xlu1 %488  ;;  %1385 = vmatprep.subr.bf16.mxu1 %v1364_v47 }
 0x3ea   :  { %v501_v62 = vsel %vm223_vm13, %v497_v59, %v489_v60 }
 0x3eb   :  { %1280 = vmatmul.mubr.msk.f32.gmra.mrb[2].mxu1 %vm247_vm14, %v501_v62  ;;  %v783_v62 = vld [vmem:[#allocation7 + $0xe0] sm:$0xff] }
 0x3ec   :  { %1391 = vmatpush3.bf16.msra.mxu1 %v1364_v47 }
 0x4ba   :  { %v1278_v0 = vpop.f32.mrb[0].mxu1 }
 0x4bb   :  { %v601_v1 = vpop.f32.mrb[1].mxu1  ;;  %v607_v15 = vadd.f32 %v1278_v0, %v1153_v63 }
 0x4bc   :  { %v602_v61 = vadd.f32 %v1153_v63, %v601_v1 }
 0x4bd   :  { %v623_v17 = vsel %vm218_vm11, %v607_v15, 0.0 }
 0x4be   :  { %v1281_v3 = vpop.f32.mrb[2].mxu1  ;;  %v620_v4 = vsel %vm218_vm11, %v602_v61, 0.0 }
 0x4bf   :  { %v617_v7 = vadd.f32 %v1281_v3, %v1153_v63  ;;  %621 = vadd.xlane.f32.xlu0 %v620_v4  ;;  %v611_v11 = vpop.f32.mrb[3].mxu1 }
 0x4c0   :  { %v612_v13 = vadd.f32 %v1153_v63, %v611_v11  ;;  %v784_v63 = vld [vmem:[#allocation7 + $0xe8] sm:$0xff] }
 0x4c1   :  { %v629_v14 = vsel %vm218_vm11, %v617_v7, 0.0  ;;  %v1368_v0 = vpack.c.bf16 %v784_v63, %v783_v62 }
 0x4c2   :  { %630 = vadd.xlane.f32.xlu1 %v629_v14  ;;  %v626_v16 = vsel %vm218_vm11, %v612_v13, 0.0 }
 0x4c3   :  { %627 = vadd.xlane.f32.xlu0 %v626_v16  ;;  %1386 = vmatprep.subr.bf16.mxu1 %v1368_v0  ;;  %v786_v16 = vld [vmem:[#allocation7 + $0xf8] sm:$0xff] }
 0x4c4   :  { %1369 = vmatprep.subr.bf16.mxu0 %v1368_v0  ;;  %1392 = vmatpush3.bf16.msra.mxu1 %v1368_v0 }
 0x4c5   :  { %1371 = vmatpush3.bf16.msra.mxu0 %v1368_v0 }
 0x4c7   :  { %624 = vadd.xlane.f32.xlu0 %v623_v17 }
 0x54c   :  { %v622_v2 = vpop.xlane.xlu0 %621 }
 0x54d   :  { %v632_v18 = vmul.f32 0.03125, %v622_v2 }
 0x54f   :  { %v631_v19 = vpop.xlane.xlu1 %630  ;;  %v1777_v24 = vsub.f32 %v602_v61, %v632_v18  ;;  %v1159_v61 = vld [vmem:[%s1928_s4 + $0x1] ss:$0 sm:$0xff] }
 0x550   :  { %v635_v20 = vmul.f32 0.03125, %v631_v19  ;;  %v628_v21 = vpop.xlane.xlu0 %627 }
 0x551   :  { %v634_v22 = vmul.f32 0.03125, %v628_v21  ;;  %v640_v33 = vmul.f32 %v1777_v24, %v1777_v24 }
 0x552   :  { %v639_v23 = vsub.f32 %v617_v7, %v635_v20  ;;  %v1161_v7 = vld [vmem:[%s1929_s5 + $0x1] ss:$0 sm:$0xff] }
 0x553   :  { %v638_v25 = vsub.f32 %v612_v13, %v634_v22  ;;  %v644_v35 = vsel %vm218_vm11, %v640_v33, 0.0 }
 0x554   :  { %v625_v26 = vpop.xlane.xlu0 %624  ;;  %v643_v27 = vmul.f32 %v639_v23, %v639_v23 }
 0x555   :  { %v633_v28 = vmul.f32 0.03125, %v625_v26  ;;  %v642_v29 = vmul.f32 %v638_v25, %v638_v25 }
 0x556   :  { %v653_v30 = vsel %vm218_vm11, %v643_v27, 0.0  ;;  %v787_v27 = vld [vmem:[#allocation7 + $0x100] sm:$0xff] }
 0x557   :  { %v1780_v31 = vsub.f32 %v607_v15, %v633_v28  ;;  %654 = vadd.xlane.f32.xlu0 %v653_v30  ;;  %v650_v32 = vsel %vm218_vm11, %v642_v29, 0.0  ;;  %v785_v15 = vld [vmem:[#allocation7 + $0xf0] sm:$0xff]  ;;  %v788_v28 = vld [vmem:[#allocation7 + $0x108] sm:$0xff] }
 0x558   :  { %651 = vadd.xlane.f32.xlu1 %v650_v32  ;;  %v1372_v18 = vpack.c.bf16 %v786_v16, %v785_v15  ;;  %v1376_v32 = vpack.c.bf16 %v788_v28, %v787_v27  ;;  %v1163_v27 = vld [vmem:[%s1927_s3 + $0x2] ss:$0 sm:$0xff] }
 0x559   :  { %v641_v34 = vmul.f32 %v1780_v31, %v1780_v31 }
 0x55a   :  { %1387 = vmatprep.subr.bf16.mxu1 %v1372_v18  ;;  %1373 = vmatprep.subr.bf16.mxu0 %v1372_v18 }
 0x55b   :  { %v647_v39 = vsel %vm218_vm11, %v641_v34, 0.0  ;;  %1393 = vmatpush3.bf16.msra.mxu1 %v1372_v18  ;;  %1375 = vmatpush3.bf16.msra.mxu0 %v1372_v18 }
 0x55c   :  { %645 = vadd.xlane.f32.xlu1 %v644_v35  ;;  %648 = vadd.xlane.f32.xlu0 %v647_v39 }
 0x55d   :  { %1388 = vmatprep.subr.bf16.mxu1 %v1376_v32  ;;  %1377 = vmatprep.subr.bf16.mxu0 %v1376_v32 }
 0x55f   :  { %1394 = vmatpush3.bf16.msra.mxu1 %v1376_v32  ;;  %1379 = vmatpush3.bf16.msra.mxu0 %v1376_v32 }
 0x560   :  { %1389 = vmatprep.subr.bf16.mxu1 %v1380_v43  ;;  %1381 = vmatprep.subr.bf16.mxu0 %v1380_v43 }
 0x563   :  { %1395 = vmatpush3.bf16.msra.mxu1 %v1380_v43  ;;  %1383 = vmatpush3.bf16.msra.mxu0 %v1380_v43 }
 0x5e4   :  { %v655_v48 = vpop.xlane.xlu0 %654 }
 0x5e5   :  { %v659_v49 = vmul.f32 0.03125, %v655_v48  ;;  %v652_v50 = vpop.xlane.xlu1 %651 }
 0x5e6   :  { %v658_v51 = vmul.f32 0.03125, %v652_v50 }
 0x5e7   :  { %v663_v52 = vadd.f32 1e-05, %v659_v49 }
 0x5e8   :  { %v662_v56 = vadd.f32 1e-05, %v658_v51 }
 0x5e9   :  { %1426 = vrsqrt.f32 %v663_v52  ;;  %v646_v54 = vpop.xlane.xlu1 %645  ;;  %v649_v57 = vpop.xlane.xlu0 %648 }
 0x5ea   :  { %1428 = vrsqrt.f32 %v662_v56  ;;  %v656_v58 = vmul.f32 0.03125, %v646_v54  ;;  %v657_v55 = vmul.f32 0.03125, %v649_v57 }
 0x5ec   :  { %v660_v59 = vadd.f32 1e-05, %v656_v58  ;;  %v661_v60 = vadd.f32 1e-05, %v657_v55 }
 0x5ee   :  { %1430 = vrsqrt.f32 %v660_v59 }
 0x5ef   :  { %1432 = vrsqrt.f32 %v661_v60 }
 0x5f3   :  { %v1427_v1 = vpop.eup %1426 }
 0x5f4   :  { %v1429_v3 = vpop.eup %1428  ;;  %v671_v4 = vmul.f32 %v1427_v1, %v639_v23 }
 0x5f5   :  { %v670_v11 = vmul.f32 %v1429_v3, %v638_v25 }
 0x5f6   :  { %v683_v13 = vmul.f32 %v1159_v61, %v671_v4 }
 0x5f7   :  { %v682_v14 = vmul.f32 %v1159_v61, %v670_v11 }
 0x5f8   :  { %v1431_v17 = vpop.eup %1430  ;;  %v695_v2 = vadd.f32 %v1161_v7, %v683_v13 }
 0x5f9   :  { %v1433_v19 = vpop.eup %1432  ;;  %v668_v20 = vmul.f32 %v1431_v17, %v1777_v24  ;;  %v694_v21 = vadd.f32 %v1161_v7, %v682_v14 }
 0x5fa   :  { %v699_v22 = vmul.f32 %v1640_v44, %v695_v2  ;;  %v669_v23 = vmul.f32 %v1433_v19, %v1780_v31 }
 0x5fb   :  { %v680_v25 = vmul.f32 %v1159_v61, %v668_v20  ;;  %v698_v26 = vmul.f32 %v1642_v45, %v694_v21 }
 0x5fc   :  { %v703_v29 = vmax.f32 %v699_v22, 0.0  ;;  %v681_v30 = vmul.f32 %v1159_v61, %v669_v23 }
 0x5fd   :  { %v692_v33 = vadd.f32 %v1161_v7, %v680_v25  ;;  %v702_v34 = vmax.f32 %v698_v26, 0.0 }
 0x5fe   :  { %748 = vrot.lane.b32.xlu0 %v703_v29, %s1538_s2  ;;  %v705_v24 = vrot.slane %v703_v29, 7  ;;  %v693_v35 = vadd.f32 %v1161_v7, %v681_v30  ;;  %v730_v50 = vrot.slane %v703_v29, 1 }
 0x5ff   :  { %v696_v31 = vmul.f32 %v1634_v37, %v692_v33  ;;  %v713_v39 = vrot.slane %v702_v34, 7  ;;  %v728_v60 = vrot.slane %v702_v34, 1 }
 0x600   :  { %v697_v42 = vmul.f32 %v1632_v36, %v693_v35 }
 0x601   :  { %v700_v46 = vmax.f32 %v696_v31, 0.0  ;;  %v715_v47 = vsel %vm136_vm6, %v713_v39, %v705_v24  ;;  %v731_v0 = vsel %vm162_vm7, %v728_v60, %v730_v50 }
 0x602   :  { %v701_v48 = vmax.f32 %v697_v42, 0.0  ;;  %v740_v1 = vsel %vm184_vm8, 0.0, %v731_v0  ;;  %v724_v2 = vsel %vm157_vm10, 0.0, %v715_v47 }
 0x603   :  { %v725_v49 = vrot.slane %v700_v46, 1  ;;  %v710_v51 = vrot.slane %v700_v46, 7 }
 0x604   :  { %744 = vrot.lane.b32.xlu1 %v701_v48, %s1538_s2  ;;  %v711_v52 = vrot.slane %v701_v48, 7  ;;  %v726_v56 = vrot.slane %v701_v48, 1 }
 0x605   :  { %v737_v54 = vsel %vm162_vm7, %v730_v50, %v725_v49  ;;  %v720_v57 = vsel %vm136_vm6, %v705_v24, %v710_v51 }
 0x606   :  { %v741_v58 = vsel %vm185_vm9, 0.0, %v737_v54  ;;  %v712_v55 = vsel %vm136_vm6, %v710_v51, %v711_v52  ;;  %v727_v59 = vsel %vm162_vm7, %v725_v49, %v726_v56  ;;  %v714_v62 = vsel %vm136_vm6, %v711_v52, %v713_v39 }
 0x607   :  { %764 = vrot.lane.b32.xlu0 %v741_v58, %s1539_s22  ;;  %v738_v63 = vsel %vm184_vm8, 0.0, %v727_v59  ;;  %v729_v61 = vsel %vm162_vm7, %v726_v56, %v728_v60  ;;  %v721_v14 = vsel %vm156_vm12, 0.0, %v720_v57  ;;  %v723_v53 = vsel %vm156_vm12, 0.0, %v714_v62 }
 0x608   :  { %742 = vrot.lane.b32.xlu1 %v700_v46, %s1538_s2  ;;  %v739_v3 = vsel %vm185_vm9, 0.0, %v729_v61  ;;  %v722_v23 = vsel %vm157_vm10, 0.0, %v712_v55 }
 0x60b   :  { %758 = vrot.lane.b32.xlu0 %v738_v63, %s1539_s22 }
 0x60c   :  { %746 = vrot.lane.b32.xlu1 %v702_v34, %s1538_s2 }
 0x610   :  { %762 = vrot.lane.b32.xlu1 %v740_v1, %s1539_s22 }
 0x614   :  { %760 = vrot.lane.b32.xlu1 %v739_v3, %s1539_s22 }
 0x670   :  { %v749_v4 = vpop.permute.xlu0 %748 }
 0x671   :  { %v773_v20 = vsel %vm218_vm11, %v724_v2, %v749_v4  ;;  %v1169_v2 = vld [vmem:[%s1928_s4 + $0x2] ss:$0 sm:$0xff]  ;;  %s1003_s4 = sld [smem:[#allocation9]] }
 0x676   :  { %v745_v7 = vpop.permute.xlu1 %744 }
 0x677   :  { %v771_v6 = vsel %vm218_vm11, %v722_v23, %v745_v7 }
 0x679   :  { %v765_v11 = vpop.permute.xlu0 %764 }
 0x67a   :  { %v743_v13 = vpop.permute.xlu1 %742  ;;  %v777_v22 = vsel %vm223_vm13, %v773_v20, %v765_v11 }
 0x67b   :  { %v770_v15 = vsel %vm218_vm11, %v721_v14, %v743_v13 }
 0x67d   :  { %v759_v38 = vpop.permute.xlu0 %758 }
 0x67e   :  { %v747_v16 = vpop.permute.xlu1 %746  ;;  %v774_v17 = vsel %vm223_vm13, %v770_v15, %v759_v38 }
 0x67f   :  { %1306 = vmatprep.mubr.msk.f32.mxu0 %vm247_vm14, %v774_v17  ;;  %v772_v18 = vsel %vm218_vm11, %v723_v53, %v747_v16 }
 0x682   :  { %v763_v19 = vpop.permute.xlu1 %762 }
 0x683   :  { %v776_v21 = vsel %vm223_vm13, %v772_v18, %v763_v19  ;;  %v1171_v19 = vld [vmem:[%s1929_s5 + $0x2] ss:$0 sm:$0xff] }
 0x684   :  { %1309 = vmatprep.mubr.msk.f32.mxu1 %vm247_vm14, %v776_v21 }
 0x685   :  { %1310 = vmatmul.mubr.msk.f32.vlgmr.msra.gmra.mrb[4].mxu1 %vm247_vm14, %v777_v22 }
 0x686   :  { %v761_v25 = vpop.permute.xlu1 %760 }
 0x687   :  { %v775_v26 = vsel %vm223_vm13, %v771_v6, %v761_v25  ;;  %v1172_v6 = vld [vmem:[%s1930_s6] ss:$0 sm:$0xff] }
 0x688   :  { %1307 = vmatmul.mubr.msk.f32.vlgmr.msra.gmra.mrb[4].mxu0 %vm247_vm14, %v775_v26 }
 0x758   :  { %v1311_v28 = vpop.f32.mrb[4].mxu1 }
 0x759   :  { %v893_v29 = vadd.f32 %v1311_v28, %v1163_v27  ;;  %v887_v30 = vpop.f32.mrb[5].mxu1 }
 0x75a   :  { %v888_v24 = vadd.f32 %v1163_v27, %v887_v30 }
 0x75b   :  { %v1308_v32 = vpop.f32.mrb[4].mxu0  ;;  %v905_v5 = vsel %vm218_vm11, %v893_v29, 0.0 }
 0x75c   :  { %906 = vadd.xlane.f32.xlu1 %v905_v5  ;;  %v877_v33 = vpop.f32.mrb[5].mxu0  ;;  %v883_v31 = vadd.f32 %v1308_v32, %v1163_v27  ;;  %v902_v39 = vsel %vm218_vm11, %v888_v24, 0.0 }
 0x75d   :  { %v878_v34 = vadd.f32 %v1163_v27, %v877_v33 }
 0x75e   :  { %v899_v40 = vsel %vm218_vm11, %v883_v31, 0.0 }
 0x75f   :  { %v896_v35 = vsel %vm218_vm11, %v878_v34, 0.0 }
 0x760   :  { %897 = vadd.xlane.f32.xlu0 %v896_v35 }
 0x764   :  { %903 = vadd.xlane.f32.xlu0 %v902_v39 }
 0x768   :  { %900 = vadd.xlane.f32.xlu0 %v899_v40 }
 0x7e9   :  { %v907_v41 = vpop.xlane.xlu1 %906 }
 0x7ea   :  { %v911_v42 = vmul.f32 0.03125, %v907_v41 }
 0x7ec   :  { %v915_v43 = vsub.f32 %v893_v29, %v911_v42 }
 0x7ed   :  { %v898_v46 = vpop.xlane.xlu0 %897 }
 0x7ee   :  { %v919_v47 = vmul.f32 %v915_v43, %v915_v43  ;;  %v908_v48 = vmul.f32 0.03125, %v898_v46 }
 0x7f0   :  { %v929_v49 = vsel %vm218_vm11, %v919_v47, 0.0  ;;  %v912_v52 = vsub.f32 %v878_v34, %v908_v48 }
 0x7f1   :  { %930 = vadd.xlane.f32.xlu0 %v929_v49  ;;  %v904_v50 = vpop.xlane.xlu0 %903 }
 0x7f2   :  { %v910_v51 = vmul.f32 0.03125, %v904_v50  ;;  %v916_v60 = vmul.f32 %v912_v52, %v912_v52 }
 0x7f4   :  { %v914_v56 = vsub.f32 %v888_v24, %v910_v51  ;;  %v920_v63 = vsel %vm218_vm11, %v916_v60, 0.0 }
 0x7f5   :  { %v901_v54 = vpop.xlane.xlu0 %900 }
 0x7f6   :  { %v909_v57 = vmul.f32 0.03125, %v901_v54  ;;  %v918_v58 = vmul.f32 %v914_v56, %v914_v56 }
 0x7f8   :  { %v913_v55 = vsub.f32 %v883_v31, %v909_v57  ;;  %v926_v59 = vsel %vm218_vm11, %v918_v58, 0.0 }
 0x7f9   :  { %927 = vadd.xlane.f32.xlu1 %v926_v59 }
 0x7fa   :  { %v917_v62 = vmul.f32 %v913_v55, %v913_v55 }
 0x7fc   :  { %v923_v0 = vsel %vm218_vm11, %v917_v62, 0.0 }
 0x7fd   :  { %921 = vadd.xlane.f32.xlu1 %v920_v63  ;;  %924 = vadd.xlane.f32.xlu0 %v923_v0 }
 0x87e   :  { %v931_v1 = vpop.xlane.xlu0 %930 }
 0x87f   :  { %v935_v61 = vmul.f32 0.03125, %v931_v1 }
 0x881   :  { %v939_v3 = vadd.f32 1e-05, %v935_v61 }
 0x883   :  { %1434 = vrsqrt.f32 %v939_v3 }
 0x886   :  { %v928_v4 = vpop.xlane.xlu1 %927 }
 0x887   :  { %v934_v7 = vmul.f32 0.03125, %v928_v4 }
 0x889   :  { %v938_v11 = vadd.f32 1e-05, %v934_v7 }
 0x88a   :  { %v922_v13 = vpop.xlane.xlu1 %921  ;;  %v925_v14 = vpop.xlane.xlu0 %924 }
 0x88b   :  { %1436 = vrsqrt.f32 %v938_v11  ;;  %v932_v15 = vmul.f32 0.03125, %v922_v13  ;;  %v933_v38 = vmul.f32 0.03125, %v925_v14 }
 0x88d   :  { %v1435_v16 = vpop.eup %1434  ;;  %v936_v17 = vadd.f32 1e-05, %v932_v15  ;;  %v937_v53 = vadd.f32 1e-05, %v933_v38 }
 0x88e   :  { %v947_v18 = vmul.f32 %v1435_v16, %v915_v43 }
 0x88f   :  { %1438 = vrsqrt.f32 %v936_v17 }
 0x890   :  { %1440 = vrsqrt.f32 %v937_v53  ;;  %v959_v20 = vmul.f32 %v1169_v2, %v947_v18 }
 0x892   :  { %v971_v21 = vadd.f32 %v1171_v19, %v959_v20 }
 0x894   :  { %v1863_v22 = vmul.f32 %v1640_v44, %v971_v21 }
 0x895   :  { %v1437_v23 = vpop.eup %1436 }
 0x896   :  { %v979_v25 = vmax.f32 %v1863_v22, 0.0  ;;  %v946_v26 = vmul.f32 %v1437_v23, %v914_v56 }
 0x898   :  { %v990_v27 = vmul.f32 %v1172_v6, %v979_v25  ;;  %v958_v28 = vmul.f32 %v1169_v2, %v946_v26 }
 0x899   :  { %v1439_v29 = vpop.eup %1438 }
 0x89a   :  { %v1441_v30 = vpop.eup %1440  ;;  %v1000_v32 = vsel %vm218_vm11, %v990_v27, 0.0  ;;  %v970_v5 = vadd.f32 %v1171_v19, %v958_v28  ;;  %v944_v33 = vmul.f32 %v1439_v29, %v912_v52 }
 0x89b   :  { %1001 = vadd.xlane.f32.xlu0 %v1000_v32  ;;  %v945_v44 = vmul.f32 %v1441_v30, %v913_v55 }
 0x89c   :  { %v1873_v34 = vmul.f32 %v1642_v45, %v970_v5  ;;  %v956_v24 = vmul.f32 %v1169_v2, %v944_v33 }
 0x89d   :  { %v957_v35 = vmul.f32 %v1169_v2, %v945_v44 }
 0x89e   :  { %v978_v31 = vmax.f32 %v1873_v34, 0.0  ;;  %v968_v39 = vadd.f32 %v1171_v19, %v956_v24 }
 0x89f   :  { %v969_v40 = vadd.f32 %v1171_v19, %v957_v35 }
 0x8a0   :  { %v989_v41 = vmul.f32 %v1172_v6, %v978_v31  ;;  %v1879_v42 = vmul.f32 %v1634_v37, %v968_v39 }
 0x8a1   :  { %v1882_v43 = vmul.f32 %v1632_v36, %v969_v40  ;;  %v1004_v36 = vstv %s1003_s4 }
 0x8a2   :  { %v997_v46 = vsel %vm218_vm11, %v989_v41, 0.0  ;;  %v976_v45 = vmax.f32 %v1879_v42, 0.0 }
 0x8a3   :  { %998 = vadd.xlane.f32.xlu1 %v997_v46  ;;  %v977_v47 = vmax.f32 %v1882_v43, 0.0 }
 0x8a4   :  { %v987_v48 = vmul.f32 %v1172_v6, %v976_v45 }
 0x8a5   :  { %v988_v49 = vmul.f32 %v1172_v6, %v977_v47 }
 0x8a6   :  { %v991_v50 = vsel %vm218_vm11, %v987_v48, 0.0 }
 0x8a7   :  { %992 = vadd.xlane.f32.xlu1 %v991_v50  ;;  %v994_v37 = vsel %vm218_vm11, %v988_v49, 0.0 }
 0x8a8   :  { %995 = vadd.xlane.f32.xlu0 %v994_v37 }
 0x928   :  { %v1002_v51 = vpop.xlane.xlu0 %1001 }
 0x929   :  { %v1008_v52 = vadd.f32 %v1004_v36, %v1002_v51 }
 0x92b   :  { %v1016_v54 = vsel %vm1012_vm15, %v1008_v52, -1e+30 }
 0x92c   :  { %v1073_v55 = vsel %vm1017_vm1, %v1016_v54, -inf }
 0x930   :  { %v999_v56 = vpop.xlane.xlu1 %998 }
 0x931   :  { %v1007_v57 = vadd.f32 %v1004_v36, %v999_v56 }
 0x933   :  { %v1015_v58 = vsel %vm1011_vm0, %v1007_v57, -1e+30 }
 0x934   :  { %v1072_v59 = vsel %vm1017_vm1, %v1015_v58, -inf  ;;  %v993_v60 = vpop.xlane.xlu1 %992 }
 0x935   :  { %v1074_v62 = vmax.f32 %v1072_v59, %v1073_v55  ;;  %v1005_v63 = vadd.f32 %v1004_v36, %v993_v60  ;;  %v996_v0 = vpop.xlane.xlu0 %995 }
 0x936   :  { %v1006_v12 = vadd.f32 %v1004_v36, %v996_v0 }
 0x937   :  { %v1075_v1 = vrot.slane %v1074_v62, 4  ;;  %v1013_v10 = vsel %vm1009_vm2, %v1005_v63, -1e+30 }
 0x938   :  { %v1018_v61 = vsel %vm1017_vm1, %v1013_v10, -inf  ;;  %v1014_v3 = vsel %vm1010_vm3, %v1006_v12, -1e+30 }
 0x939   :  { %v1076_v4 = vmax.f32 %v1074_v62, %v1075_v1  ;;  %v1019_v7 = vsel %vm1017_vm1, %v1014_v3, -inf }
 0x93a   :  { %v1020_v11 = vmax.f32 %v1018_v61, %v1019_v7 }
 0x93b   :  { %v1077_v13 = vrot.slane %v1076_v4, 2 }
 0x93c   :  { %v1021_v14 = vrot.slane %v1020_v11, 4 }
 0x93d   :  { %v1078_v15 = vmax.f32 %v1076_v4, %v1077_v13 }
 0x93e   :  { %v1022_v8 = vmax.f32 %v1020_v11, %v1021_v14 }
 0x93f   :  { %v1079_v38 = vrot.slane %v1078_v15, 1 }
 0x940   :  { %v1023_v16 = vrot.slane %v1022_v8, 2 }
 0x941   :  { %v1080_v17 = vmax.f32 %v1078_v15, %v1079_v38 }
 0x942   :  { %v1024_v53 = vmax.f32 %v1022_v8, %v1023_v16 }
 0x943   :  { %v1081_v2 = vsub.f32 %v1015_v58, %v1080_v17  ;;  %v1082_v9 = vsub.f32 %v1016_v54, %v1080_v17  ;;  %v1066_v17 = vld [vmem:[%s1931_s7] sm:$0x1] }
 0x944   :  { %v1025_v18 = vrot.slane %v1024_v53, 1 }
 0x945   :  { %v1083_v19 = vmul.f32 1.442695, %v1081_v2  ;;  %v1085_v20 = vmul.f32 1.442695, %v1082_v9 }
 0x946   :  { %v1026_v21 = vmax.f32 %v1024_v53, %v1025_v18 }
 0x947   :  { %1442 = vpow2.f32 %v1083_v19 }
 0x948   :  { %1444 = vpow2.f32 %v1085_v20  ;;  %v1027_v23 = vsub.f32 %v1013_v10, %v1026_v21  ;;  %v1028_v6 = vsub.f32 %v1014_v3, %v1026_v21 }
 0x94a   :  { %v1029_v26 = vmul.f32 1.442695, %v1027_v23  ;;  %v1031_v27 = vmul.f32 1.442695, %v1028_v6  ;;  %v1129_v6 = vstv %s1173_s18 }
 0x94c   :  { %1446 = vpow2.f32 %v1029_v26 }
 0x94d   :  { %1448 = vpow2.f32 %v1031_v27 }
 0x951   :  { %v1443_v28 = vpop.eup %1442 }
 0x952   :  { %v1445_v29 = vpop.eup %1444  ;;  %v1087_v30 = vsel %vm1017_vm1, %v1443_v28, 0.0 }
 0x953   :  { %v1088_v32 = vsel %vm1017_vm1, %v1445_v29, 0.0 }
 0x954   :  { %v1089_v5 = vadd.f32 %v1088_v32, %v1087_v30 }
 0x956   :  { %v1447_v33 = vpop.eup %1446  ;;  %v1090_v44 = vrot.slane %v1089_v5, 4 }
 0x957   :  { %v1449_v24 = vpop.eup %1448  ;;  %v1033_v35 = vsel %vm1017_vm1, %v1447_v33, 0.0 }
 0x958   :  { %v1091_v39 = vadd.f32 %v1090_v44, %v1089_v5  ;;  %v1034_v40 = vsel %vm1017_vm1, %v1449_v24, 0.0 }
 0x959   :  { %v1035_v41 = vadd.f32 %v1034_v40, %v1033_v35 }
 0x95a   :  { %v1092_v46 = vrot.slane %v1091_v39, 2 }
 0x95b   :  { %v1036_v48 = vrot.slane %v1035_v41, 4 }
 0x95c   :  { %v1093_v49 = vadd.f32 %v1092_v46, %v1091_v39 }
 0x95d   :  { %v1037_v50 = vadd.f32 %v1036_v48, %v1035_v41 }
 0x95e   :  { %v1094_v37 = vrot.slane %v1093_v49, 1 }
 0x95f   :  { %v1038_v36 = vrot.slane %v1037_v50, 2 }
 0x960   :  { %v1095_v51 = vadd.f32 %v1094_v37, %v1093_v49 }
 0x961   :  { %v1039_v52 = vadd.f32 %v1038_v36, %v1037_v50 }
 0x962   :  { %1450 = vrcp.f32 %v1095_v51 }
 0x963   :  { %v1040_v56 = vrot.slane %v1039_v52, 1 }
 0x965   :  { %v1041_v54 = vadd.f32 %v1040_v56, %v1039_v52 }
 0x967   :  { %1452 = vrcp.f32 %v1041_v54 }
 0x96c   :  { %v1451_v57 = vpop.eup %1450 }
 0x96d   :  { %v1098_v58 = vmul.f32 %v1451_v57, %v1445_v29  ;;  %v1097_v55 = vmul.f32 %v1451_v57, %v1443_v28 }
 0x96f   :  { %1106 = vperm.xlu0 %1406, %v1098_v58   ;;  %1101 = vperm.xlu1 %1417, %v1097_v55  }
 0x971   :  { %v1453_v59 = vpop.eup %1452 }
 0x972   :  { %v1043_v60 = vmul.f32 %v1453_v59, %v1447_v33  ;;  %v1044_v62 = vmul.f32 %v1453_v59, %v1449_v24 }
 0x974   :  { %1047 = vperm.xlu1 %1417, %v1043_v60  }
 0x978   :  { %1052 = vperm.xlu1 %1417, %v1044_v62  }
 0x9ee   :  { %v1102_v63 = vpop.permute.xlu1 %1101  ;;  %v1107_v0 = vpop.permute.xlu0 %1106 }
 0x9ef   :  { %v1109_v12 = vmul.f32 %v1102_v63, %v978_v31  ;;  %v1110_v1 = vmul.f32 %v1107_v0, %v979_v25 }
 0x9f1   :  { %v1111_v10 = vsel %vm218_vm11, %v1109_v12, 0.0  ;;  %v1112_v61 = vsel %vm218_vm11, %v1110_v1, 0.0 }
 0x9f2   :  { %v1113_v3 = vadd.f32 %v1112_v61, %v1111_v10 }
 0x9f3   :  { %v1048_v4 = vpop.permute.xlu1 %1047 }
 0x9f4   :  { %v1114_v7 = vrot.slane %v1113_v3, 4  ;;  %v1055_v13 = vmul.f32 %v1048_v4, %v976_v45 }
 0x9f6   :  { %v1115_v11 = vadd.f32 %v1114_v7, %v1113_v3  ;;  %v1057_v31 = vsel %vm218_vm11, %v1055_v13, 0.0 }
 0x9f7   :  { %v1053_v14 = vpop.permute.xlu1 %1052 }
 0x9f8   :  { %v1116_v15 = vrot.slane %v1115_v11, 2  ;;  %v1056_v34 = vmul.f32 %v1053_v14, %v977_v47 }
 0x9fa   :  { %v1058_v22 = vsel %vm218_vm11, %v1056_v34, 0.0  ;;  %v1117_v25 = vadd.f32 %v1116_v15, %v1115_v11 }
 0x9fb   :  { %v1059_v8 = vadd.f32 %v1058_v22, %v1057_v31 }
 0x9fc   :  { %v1118_v38 = vrot.slane %v1117_v25, 1 }
 0x9fd   :  { %v1060_v16 = vrot.slane %v1059_v8, 4 }
 0x9fe   :  { %v1119_v53 = vadd.f32 %v1118_v38, %v1117_v25 }
 0x9ff   :  { %v1061_v42 = vadd.f32 %v1060_v16, %v1059_v8 }
 0xa00   :  { %v1120_v45 = vmul.f32 %v1119_v53, %v1066_v17 }
 0xa01   :  { %v1062_v2 = vrot.slane %v1061_v42, 2 }
 0xa02   :  { %v1121_v9 = vsel %vm1068_vm4, %v1120_v45, 0.0 }
 0xa03   :  { %1122 = vadd.xlane.f32.xlu0 %v1121_v9  ;;  %v1063_v43 = vadd.f32 %v1062_v2, %v1061_v42 }
 0xa05   :  { %v1064_v47 = vrot.slane %v1063_v43, 1 }
 0xa07   :  { %v1065_v18 = vadd.f32 %v1064_v47, %v1063_v43 }
 0xa09   :  { %v1067_v19 = vmul.f32 %v1066_v17, %v1065_v18 }
 0xa0b   :  { %v1069_v20 = vsel %vm1068_vm4, %v1067_v19, 0.0 }
 0xa0c   :  { %1070 = vadd.xlane.f32.xlu1 %v1069_v20 }
 0xa90   :  { %v1123_v21 = vpop.xlane.xlu0 %1122 }
 0xa91   :  { %v1125_v23 = vrot.slane %v1123_v21, 7 }
 0xa99   :  { %v1071_v26 = vpop.xlane.xlu1 %1070 }
 0xa9a   :  { %v1127_v27 = vsel %vm136_vm6, %v1071_v26, %v1125_v23 }
 0xa9b   :  { %v1130_v28 = vadd.f32 %v1129_v6, %v1127_v27 }
 0xa9d   :  { %1132 = vst.msk [vmem:[%s1933_s9] sm:$0x3] %vm1131_vm5, %v1130_v28 }
 0xa9e   :  { %1137 = vsyncpa [#allocation5], 1 }
 0xa9f   :  { %1138 = vsyncpa [#allocation8], 1 }
 0xaa0   :  { %1139 = vsyncpa [#allocation6], 1 }

</bundles_post_ra>
